<compile_context>
chip_gen: v6e
topology: v6e:2x2x1
jax: 0.10.0
libtpu: 0.0.40
codegen_flags: <defaults>
</compile_context>

<pallas_src>
import jax
import jax.numpy as jnp
from jax.experimental import pallas as pl
from jax.experimental.pallas import tpu as pltpu

BINS = 100             # module default: bins=100
PADDED_BINS = 128      # lane-dense bin axis (extra bins stay zero)
NORMALIZE = False      # module default: normalize=False (count histogram)
SIGMA = 1.0            # deterministic MMD kernel bandwidth (no learnable params)
HIST_RANGE = (0.0, 2.0)
NODE_CHUNK = 128       # bound the (batch_chunk, node_chunk, 128) one-hot working set
BATCH_CHUNK = 64       # ... in both directions (v5e 16 MiB / v7x 32 MiB scoped VMEM)

LANE = 128


def _round_up(x, m):
    return ((x + m - 1) // m) * m


# ----------------------------------------------------------------------------
# Kernel 1: normalized Laplacian  L = D^{-1/2} (D - A) D^{-1/2}
#   Exact simplified form (incl. A's diagonal):
#     off-diag:  -(inv ⊗ inv) * A
#     diag:       inv^2 * deg - inv^2 * A_ii    (== 1 - inv^2*A_ii where deg>0, 0 else)
#   Implemented as a single diagonal select; no (bt, N, N) eye*diag temporary.
#   Zero-padded (degree-0) rows/cols produce zero rows/cols, sliced away later.
# ----------------------------------------------------------------------------
def _normalized_laplacian_kernel(a_ref, l_ref):
    a = a_ref[...].astype(jnp.float32)                        # (bt, Np, Np)
    bt, n, _ = a.shape

    deg = jnp.sum(a, axis=-1)                                 # (bt, Np)
    pos = deg > 0.0
    inv_sqrt = jnp.where(pos, jax.lax.rsqrt(jnp.where(pos, deg, 1.0)), 0.0)
    diag_val = inv_sqrt * inv_sqrt * deg                      # == 1 where deg>0 else 0

    scaled_a = (inv_sqrt[:, :, None] * a) * inv_sqrt[:, None, :]

    row = jax.lax.broadcasted_iota(jnp.int32, (n, n), 0)
    col = jax.lax.broadcasted_iota(jnp.int32, (n, n), 1)
    is_diag = (row == col)[None, :, :]                        # (1, Np, Np)

    l_ref[...] = jnp.where(is_diag, diag_val[:, :, None] - scaled_a, -scaled_a)


def normalized_laplacian_pair(adj_1, adj_2):
    """Both batches in one launch; node dim zero-padded to a multiple of 128."""
    b1, n1, _ = adj_1.shape
    b2, n2, _ = adj_2.shape
    n_pad = _round_up(max(n1, n2), LANE)

    # Lane-dense padding at the pallas_call boundary (sliced back before eigvalsh).
    a1 = jnp.pad(adj_1.astype(jnp.float32),
                 ((0, 0), (0, n_pad - n1), (0, n_pad - n1)))
    a2 = jnp.pad(adj_2.astype(jnp.float32),
                 ((0, 0), (0, n_pad - n2), (0, n_pad - n2)))
    adj = jnp.concatenate([a1, a2], axis=0)                   # (b1+b2, Np, Np)
    b_total = b1 + b2

    # VMEM sizing: 2x double-buffered f32 I/O (16 B/elem) + ~3 block-sized f32
    # temporaries inside the kernel (~12 B/elem) -> ~28 B per block element.
    bytes_per_elem = 28
    budget_bytes = 12 * 1024 * 1024                           # safe on v5e/v6e/v7x
    block_b = max(1, min(b_total, budget_bytes // (n_pad * n_pad * bytes_per_elem)))
    if b_total >= 2:
        # Keep >= 2 grid steps so the v7x second TensorCore is never idle.
        block_b = min(block_b, pl.cdiv(b_total, 2))
    grid = (pl.cdiv(b_total, block_b),)

    lap = pl.pallas_call(
        _normalized_laplacian_kernel,
        out_shape=jax.ShapeDtypeStruct((b_total, n_pad, n_pad), jnp.float32),
        grid=grid,
        in_specs=[pl.BlockSpec((block_b, n_pad, n_pad), lambda b: (b, 0, 0))],
        out_specs=pl.BlockSpec((block_b, n_pad, n_pad), lambda b: (b, 0, 0)),
        compiler_params=pltpu.CompilerParams(
            dimension_semantics=("parallel",),
            vmem_limit_bytes=32 * 1024 * 1024),
    )(adj)

    # Slice padding away BEFORE eigvalsh (padded zero rows would otherwise add
    # spurious zero eigenvalues into bin 0).
    lap_1 = lap[:b1, :n1, :n1]
    lap_2 = lap[b1:, :n2, :n2]
    return lap_1, lap_2


# ----------------------------------------------------------------------------
# Kernel 2 (fused): eigenvalue histograms (lane-padded to 128 bins, VMEM-only)
# + Gaussian-RBF MMD^2 between the two histogram sets.
#   torch.histogram semantics: values outside [0, 2] are dropped, last bin is
#   right-inclusive, density=False -> raw counts.
#   k(x, y) = exp(-||x - y||^2 / (2 sigma^2))
#   MMD^2   = mean(K11) + mean(K22) - 2 mean(K12)   (biased V-statistic)
# ----------------------------------------------------------------------------
def _hist_counts(ev):
    """ev: (B, N) f32 -> (B, PADDED_BINS) f32 counts; bins >= BINS stay zero."""
    b_tot, n_tot = ev.shape
    lo, hi = HIST_RANGE
    width = (hi - lo) / BINS

    batch_hists = []
    for bstart in range(0, b_tot, BATCH_CHUNK):               # static chunking: bounds
        bsize = min(BATCH_CHUNK, b_tot - bstart)               # the one-hot working set
        hist = jnp.zeros((bsize, PADDED_BINS), jnp.float32)
        for nstart in range(0, n_tot, NODE_CHUNK):
            nsize = min(NODE_CHUNK, n_tot - nstart)
            chunk = ev[bstart:bstart + bsize, nstart:nstart + nsize]   # (bsize, nsize)
            idx = jnp.floor((chunk - lo) / width).astype(jnp.int32)
            idx = jnp.clip(idx, 0, BINS - 1)                  # right edge of last bin
            in_range = (chunk >= lo) & (chunk <= hi)

            bin_iota = jax.lax.broadcasted_iota(
                jnp.int32, (bsize, nsize, PADDED_BINS), 2)
            onehot = ((bin_iota == idx[:, :, None])
                      & in_range[:, :, None]).astype(jnp.float32)       # (bs, ns, 128)

            # Node-axis reduction on the MXU instead of an XLU sublane reduce:
            # batched (1 x nsize) @ (nsize x 128) per graph; exact f32 counts.
            ones_vec = jnp.ones((bsize, 1, nsize), jnp.float32)
            counts = jax.lax.dot_general(
                ones_vec, onehot,
                dimension_numbers=(((2,), (1,)), ((0,), (0,))),
                preferred_element_type=jnp.float32)            # (bs, 1, 128)
            hist = hist + counts[:, 0, :]
        batch_hists.append(hist)

    hist = batch_hists[0] if len(batch_hists) == 1 else jnp.concatenate(batch_hists, 0)
    if NORMALIZE:
        total = jnp.sum(hist, axis=-1, keepdims=True)
        hist = hist / jnp.maximum(total * width, 1e-12)
    return hist


def _hist_mmd_kernel(ev1_ref, ev2_ref, out_ref):
    h1 = _hist_counts(ev1_ref[...])                            # (B1, 128)
    h2 = _hist_counts(ev2_ref[...])                            # (B2, 128)
    b1, b2 = h1.shape[0], h2.shape[0]
    bt = b1 + b2

    # Single fused Gram over concat([h1, h2]): one MXU pass (K = 128, aligned).
    h = jnp.concatenate([h1, h2], axis=0)                      # (Bt, 128)
    sq = jnp.sum(h * h, axis=-1, keepdims=True)                # (Bt, 1)
    gram = jax.lax.dot_general(
        h, h, (((1,), (1,)), ((), ())),
        preferred_element_type=jnp.float32)                    # (Bt, Bt)
    d2 = jnp.maximum(sq + jnp.transpose(sq) - 2.0 * gram, 0.0)
    kmat = jnp.exp(-d2 / (2.0 * SIGMA * SIGMA))

    row = jax.lax.broadcasted_iota(jnp.int32, (bt, bt), 0)
    col = jax.lax.broadcasted_iota(jnp.int32, (bt, bt), 1)
    m11 = ((row < b1) & (col < b1)).astype(jnp.float32)
    m22 = ((row >= b1) & (col >= b1)).astype(jnp.float32)

    def full_sum(x):                                           # -> (1, 1)
        return jnp.sum(jnp.sum(x, axis=1, keepdims=True), axis=0, keepdims=True)

    s_all = full_sum(kmat)
    s11 = full_sum(kmat * m11)
    s22 = full_sum(kmat * m22)
    s12 = 0.5 * (s_all - s11 - s22)                            # symmetry: no 3rd masked pass

    out_ref[...] = (s11 / float(b1 * b1)
                    + s22 / float(b2 * b2)
                    - 2.0 * s12 / float(b1 * b2))


def histogram_mmd(ev1, ev2):
    b1, n1 = ev1.shape
    b2, n2 = ev2.shape
    out = pl.pallas_call(
        _hist_mmd_kernel,
        out_shape=jax.ShapeDtypeStruct((1, 1), jnp.float32),
        in_specs=[pl.BlockSpec((b1, n1), lambda: (0, 0)),
                  pl.BlockSpec((b2, n2), lambda: (0, 0))],
        out_specs=pl.BlockSpec((1, 1), lambda: (0, 0)),
    )(ev1.astype(jnp.float32), ev2.astype(jnp.float32))
    return out[0, 0]


# ----------------------------------------------------------------------------
# Full forward: adjacency batches -> MMD of Laplacian-spectrum histograms
# ----------------------------------------------------------------------------
def laplacian_spectrum_mmd(adj_1, adj_2):
    lap_1, lap_2 = normalized_laplacian_pair(adj_1, adj_2)
    # TODO(synk): eigendecomposition done in plain JAX (no Pallas equivalent);
    #             end-to-end time is typically dominated by this step.
    ev_1 = jnp.linalg.eigvalsh(lap_1)                          # (B1, N1)
    ev_2 = jnp.linalg.eigvalsh(lap_2)                          # (B2, N2)
    return histogram_mmd(ev_1, ev_2)


# ----------------------------------------------------------------------------
# Example run
# ----------------------------------------------------------------------------
def _make_adjacency(key, num_graphs, num_nodes, p=0.4):
    u = jax.random.uniform(key, (num_graphs, num_nodes, num_nodes))
    a = (u < p).astype(jnp.float32)
    a = jnp.triu(a, 1)
    a = a + jnp.transpose(a, (0, 2, 1))                        # symmetric, no self-loops
    return a


if __name__ == "__main__":
    key = jax.random.PRNGKey(0)
    k1, k2 = jax.random.split(key)
    B, N = 4, 8
    adj_1 = _make_adjacency(k1, B, N)
    adj_2 = _make_adjacency(k2, B, N)

    result = laplacian_spectrum_mmd(adj_1, adj_2)
    jax.block_until_ready(result)
    print("KERNEL_OK")
</pallas_src>

<mosaic_0001>
module attributes {stable_mosaic.version = 11 : i64} {
  func.func @_normalized_laplacian_kernel(%arg0: i32, %arg1: memref<4x128x128xf32, #tpu.memory_space<vmem>>, %arg2: memref<4x128x128xf32, #tpu.memory_space<vmem>>) attributes {dimension_semantics = [#tpu.dimension_semantics<parallel>], iteration_bounds = array<i64: 2>, scalar_prefetch = 0 : i64, scratch_operands = 0 : i64, tpu.core_type = #tpu.core_type<tc>, window_params = [{transform_indices = @transform_0, window_bounds = array<i64: 4, 128, 128>}, {transform_indices = @transform_1, window_bounds = array<i64: 4, 128, 128>}]} {
    %c0 = arith.constant 0 : index
    %c0_0 = arith.constant 0 : index
    %c0_1 = arith.constant 0 : index
    %0 = vector.load %arg1[%c0, %c0_0, %c0_1] : memref<4x128x128xf32, #tpu.memory_space<vmem>>, vector<4x128x128xf32>
    %cst = arith.constant dense<0.000000e+00> : vector<4x128xf32>
    %1 = vector.multi_reduction <add>, %0, %cst [2] : vector<4x128x128xf32> to vector<4x128xf32>
    %cst_2 = arith.constant 0.000000e+00 : f32
    %2 = vector.broadcast %cst_2 : f32 to vector<4x128xf32>
    %3 = arith.cmpf ogt, %1, %2 : vector<4x128xf32>
    %cst_3 = arith.constant 1.000000e+00 : f32
    %4 = vector.broadcast %cst_3 : f32 to vector<4x128xf32>
    %5 = arith.select %3, %1, %4 : vector<4x128xi1>, vector<4x128xf32>
    %6 = math.rsqrt %5 : vector<4x128xf32>
    %cst_4 = arith.constant 0.000000e+00 : f32
    %7 = vector.broadcast %cst_4 : f32 to vector<4x128xf32>
    %8 = arith.select %3, %6, %7 : vector<4x128xi1>, vector<4x128xf32>
    %9 = arith.mulf %8, %8 : vector<4x128xf32>
    %10 = arith.mulf %9, %1 : vector<4x128xf32>
    %11 = vector.shape_cast %8 : vector<4x128xf32> to vector<4x128x1xf32>
    %12 = vector.broadcast %11 : vector<4x128x1xf32> to vector<4x128x128xf32>
    %13 = arith.mulf %12, %0 : vector<4x128x128xf32>
    %14 = vector.shape_cast %8 : vector<4x128xf32> to vector<4x1x128xf32>
    %15 = vector.broadcast %14 : vector<4x1x128xf32> to vector<4x128x128xf32>
    %16 = arith.mulf %13, %15 : vector<4x128x128xf32>
    %17 = tpu.iota {dimensions = array<i32: 0>} : vector<128x128xi32>
    %18 = tpu.iota {dimensions = array<i32: 1>} : vector<128x128xi32>
    %19 = arith.cmpi eq, %17, %18 : vector<128x128xi32>
    %20 = vector.shape_cast %19 : vector<128x128xi1> to vector<1x128x128xi1>
    %21 = vector.shape_cast %10 : vector<4x128xf32> to vector<4x128x1xf32>
    %22 = vector.broadcast %21 : vector<4x128x1xf32> to vector<4x128x128xf32>
    %23 = arith.subf %22, %16 : vector<4x128x128xf32>
    %cst_5 = arith.constant 0.000000e+00 : f32
    %24 = vector.broadcast %cst_5 : f32 to vector<4x128x128xf32>
    %25 = arith.subf %24, %16 : vector<4x128x128xf32>
    %26 = vector.shape_cast %20 : vector<1x128x128xi1> to vector<1x128x128xi1>
    %27 = vector.broadcast %26 : vector<1x128x128xi1> to vector<4x128x128xi1>
    %28 = arith.select %27, %23, %25 : vector<4x128x128xi1>, vector<4x128x128xf32>
    %c0_6 = arith.constant 0 : index
    %c0_7 = arith.constant 0 : index
    %c0_8 = arith.constant 0 : index
    %29 = vector.load %arg2[%c0_6, %c0_7, %c0_8] : memref<4x128x128xf32, #tpu.memory_space<vmem>>, vector<4x128x128xf32>
    tpu.vector_store %arg2[%c0_6, %c0_7, %c0_8], %28 {strides = array<i32>} : memref<4x128x128xf32, #tpu.memory_space<vmem>>, vector<4x128x128xf32>,
    return
  }
  func.func @transform_0(%arg0: i32) -> (i32, i32, i32) {
    %c0_i32 = arith.constant 0 : i32
    %c0_i32_0 = arith.constant 0 : i32
    %c0_i32_1 = arith.constant 0 : i32
    return %arg0, %c0_i32, %c0_i32_0 : i32, i32, i32
  }
  func.func @transform_1(%arg0: i32) -> (i32, i32, i32) {
    %c0_i32 = arith.constant 0 : i32
    %c0_i32_0 = arith.constant 0 : i32
    %c0_i32_1 = arith.constant 0 : i32
    return %arg0, %c0_i32, %c0_i32_0 : i32, i32, i32
  }
}

</mosaic_0001>

<bundles_post_ra>
// kernel: tpu_custom_call.1
= control target key start
LH: loop header
LB: loop body
LE: loop exit
PB: predicated region body
PF: predicated region fallthrough
CT: control target
= control target key end

     0   :  { %6 = vsyncpa [#allocation3], 0  ;;  %s4253_s0 = inlined_call_operand.hbm [shape: f32[8,128,128], index: 0, kind: input, shape index: {}]   ;;  %s4254_s1 = inlined_call_operand.hbm [shape: f32[8,128,128], index: 1, kind: output, shape index: {}]  }
   0x1   :  { %8 = vsyncpa [#allocation3 + $0x1], 0 }
   0x2   :  { %9 = vsyncpa [#allocation4], 0 }
   0x3   :  { %11 = vsyncpa [#allocation4 + $0x1], 0  ;;  %s2044_s6 = smov 0   ;;  %s2046_s7 = smov 0  }
   0x4   :  { %s2048_s8 = smov 0   ;;  %s2050_s9 = smov 0  }
   0x5 LB: > { %s2065_s10 = sadd.s32 4294967295, %s2026_s9   ;;  %s1697_s11 = sadd.s32 4294967294, %s2026_s9   ;;  %s2026_s9 = sphi %s2050_s9, %s4750_s9   ;;  %s2022_s8 = sphi %s2048_s8, %s4749_s8   ;;  %s2018_s7 = sphi %s2046_s7, %s4748_s7   ;;  %s2014_s6 = sphi %s2044_s6, %s4747_s6  }
   0x6   : > { %s2069_s12 = sadd.s32 1, %s2026_s9   ;;  %s24_s13 = sadd.s32 1, %s2022_s8 }
   0x7   : > { %s21_s14 = ssub.s32 %s2026_s9, %s2069_s12  ;;  %p31_p0 = scmp.ne.s32.totalorder %s2022_s8, %s2018_s7 }
   0x8   : > { %p22_p1 = scmp.eq.s32.totalorder %s21_s14, 0  ;;  %p32_p2 = scmp.eq.s32.totalorder %s2026_s9, 0 }
   0x9   : > { %p37_p3 = scmp.ne.s32.totalorder %s2018_s7, %s2014_s6  ;;  %p38_p4 = scmp.eq.s32.totalorder %s2065_s10, 0 }
   0xa   : > { %s2081_s15 = scalar_select %p22_p1, %s2022_s8, %s24_s13  }
   0xb   : > { %p2083_p5 = por %p32_p2, %p31_p0  ;;  %p2087_p6 = por %p38_p4, %p37_p3 }
   0xc   : > { %p61_p7 = scmp.eq.s32.totalorder %s2065_s10, 1  ;;  %p67_p8 = scmp.eq.s32.totalorder %s1697_s11, 1 }
   0xd   : > { %s4355_s17 = scalar_select %p2087_p6, 1, 0 }
   0xe   : > { %p1729_p10 = scmp.lt.s32.totalorder %s2026_s9, 2  ;;  %p2094_p11 = por %p61_p7, %p31_p0 }
   0xf   : > { %p2098_p12 = por %p67_p8, %p37_p3  ;;  %s87_s20 = sand.u32 1, %s2022_s8  }
  0x10   : > { %s4356_s18 = scalar_select %p2094_p11, 1, 0 }
  0x11   : > { %s4357_s19 = scalar_select %p2098_p12, 1, 0 }
  0x12   : > { %s1714_s21 = sshll.u32 %s2026_s9, 13  ;;  %s1700_s22 = sshll.u32 %s87_s20, 9 }
  0x13   : > { %s2107_s25 = scalar_lea.hbm %s4253_s0, %s1714_s21  ;;  %s91_s26 = scalar_lea.vmem [#allocation2], %s1700_s22 }
  0x14   : > { %s99_s27 = sshll.u32 %s91_s26, 4  ;;  %p2111_p13 = pnand %p1729_p10, %p2083_p5  ;;  %s2115_s27 = int_to_ptr.vmem [resolvable:$true] %s99_s27 }
  0x15   : > { %s2117_s29 = scalar_lea.sflag [#allocation3], %s87_s20  ;;  %s1934_s30 = scalar_lea.hbm %s2107_s25, 8192 }
  0x16   : > { %p1935_p0 = scmp.ne.s32.totalorder %s2107_s25, %s1934_s30  ;;  %p1936_p1 = pneg %p2111_p13 }
  0x17   : > { %s1939_s4 = scalar_lea.hbm %s4253_s0, 16384  ;;  %p1940_p4 = scmp.lt.s32.totalorder %s2107_s25, %s4253_s0 }
  0x18   : > { %p1937_p2 = pnand %p1936_p1, %p1935_p0  ;;  %p1941_p5 = scmp.lt.s32.totalorder %s1939_s4, %s1934_s30 }
  0x1a   : > { %p1938_p3 = pneg %p1937_p2  ;;  %p1942_p7 = por %p1941_p5, %p1940_p4 }
  0x1c   : > { %p1943_p8 = pnand %p1942_p7, %p1938_p3 }
  0x1e   : > { %1946 = shalt.err (!%p1943_p8)
}
  0x1f   : > { %s1947_s13 = scalar_lea.vmem %s2115_s27, 8192  ;;  %s2028_s14 = smov [#allocation2]  }
  0x20   : > { %p1948_p10 = scmp.ne.s32.totalorder %s2115_s27, %s1947_s13  ;;  %s1952_s16 = sshll.u32 %s2028_s14, 4  ;;  %s1953_s16 = int_to_ptr.vmem [resolvable:$false] %s1952_s16 }
  0x21   : > { %s1954_s20 = scalar_lea.vmem %s1953_s16, 16384  ;;  %p1955_p2 = scmp.lt.s32.totalorder %s2115_s27, %s1953_s16 }
  0x22   : > { %p1950_p9 = pnand %p1948_p10, %p1936_p1  ;;  %p1956_p12 = scmp.lt.s32.totalorder %s1954_s20, %s1947_s13 }
  0x24   : > { %p1951_p0 = pneg %p1950_p9  ;;  %p1957_p11 = por %p1956_p12, %p1955_p2 }
  0x26   : > { %p1958_p6 = pnand %p1957_p11, %p1951_p0 }
  0x28   : > { %1961 = shalt.err (!%p1958_p6)
}
  0x29   : > { %s2029_s21 = smov 128   ;;  %s2030_s22 = smov 8  }
  0x2a   : > { %1724 = dma.hbm_to_vmem [thread:$0]  (!%p2111_p13), %s2107_s25, 8192, %s2115_s27, %s2117_s29, %s2029_s21, %s2029_s21, %s2030_s22  }
  0x2b   : > { %p1704_p9 = scmp.ge.s32.totalorder %s2026_s9, 1  ;;  %p107_p1 = scmp.lt.s32.totalorder %s2026_s9, 3 }
  0x2d   : > { %p108_p3 = pnand %p1704_p9, %p107_p1 }
  0x2f   : > { %111 = sbr.rel (%p108_p3) target bundleno = 469 (0x1d5), region = 24 }
  0x34   : > { %s2141_s23 = sand.u32 1, %s2018_s7   ;;  %p4359_p6 = scmp.ne.s32.totalorder %s4355_s17, 0 }
  0x35   : > { %s1705_s24 = sshll.u32 %s2141_s23, 9  ;;  %s114_s26 = scalar_lea.sflag [#allocation3], %s2141_s23 }
  0x36   : > { %s2147_s30 = scalar_lea.vmem [#allocation2], %s1705_s24 }
  0x37   : > { %2005 = dma.done.wait (%p4359_p6), %s114_s26, 8192  }
  0x38   : > { %2007 = vsyncadd (%p4359_p6), %s114_s26, 4294959104  ;;  %v2154_v0 = vld [vmem:[%s2147_s30 + $0x10] sm:$0xff]  ;;  %v2157_v1 = vld [vmem:[%s2147_s30] sm:$0xff]  ;;  %vm853_vm10 = vcmask 130112   ;;  %vm860_vm11 = vcmask 195712   ;;  %vm867_vm12 = vcmask 261312  }
  0x39   : > { %206 = vadd.xlane.f32.xlu1 %v2154_v0  ;;  %202 = vadd.xlane.f32.xlu0 %v2157_v1  ;;  %v2162_v2 = vld [vmem:[%s2147_s30 + $0x18] sm:$0xff]  ;;  %v2165_v3 = vld [vmem:[%s2147_s30 + $0x8] sm:$0xff]  ;;  %v2173_v5 = vld [vmem:[%s2147_s30 + $0x20] sm:$0xff]  ;;  %vm4279_vm14 = vcmask 326912   ;;  %s3811_s17 = scalar_lea.vmem [#allocation5], %s1705_s24  ;;  %s1716_s25 = sshll.u32 %s2065_s10, 13 }
  0x3a   : > { %v2170_v4 = vld [vmem:[%s2147_s30 + $0x28] sm:$0xff]  ;;  %v2178_v6 = vld [vmem:[%s2147_s30 + $0x38] sm:$0xff]  ;;  %v2181_v7 = vld [vmem:[%s2147_s30 + $0x30] sm:$0xff]  ;;  %s1624_s27 = sshll.u32 %s3811_s17, 4  ;;  %s4172_s29 = scalar_lea.hbm %s4254_s1, %s1716_s25  ;;  %s4174_s27 = int_to_ptr.vmem [resolvable:$true] %s1624_s27 }
  0x3b   : > { %v2186_v8 = vld [vmem:[%s2147_s30 + $0x80] sm:$0xff]  ;;  %v2197_v11 = vld [vmem:[%s2147_s30 + $0x88] sm:$0xff]  ;;  %v2210_v14 = vld [vmem:[%s2147_s30 + $0x90] sm:$0xff]  ;;  %s1610_s2 = scalar_lea.sflag [#allocation4], %s2141_s23  ;;  %s1962_s3 = scalar_lea.vmem %s4174_s27, 8192 }
  0x3c   : > { %v2189_v9 = vld [vmem:[%s2147_s30 + $0x40] sm:$0xff]  ;;  %4362 = vst [vmem:[#allocation10_spill] sm:$0xff] %v2197_v11  ;;  %v2205_v13 = vld [vmem:[%s2147_s30 + $0x108] sm:$0xff]  ;;  %4365 = vst [vmem:[#allocation13_spill] sm:$0xff] %v2210_v14  ;;  %p1963_p11 = scmp.ne.s32.totalorder %s4174_s27, %s1962_s3  ;;  %p4744_p12 = scmp.ne.s32.totalorder %s4356_s18, 0 }
  0x3d   : > { %208 = vadd.xlane.f32.xlu1 %v2162_v2  ;;  %204 = vadd.xlane.f32.xlu0 %v2165_v3  ;;  %4360 = vst [vmem:[#allocation8_spill] sm:$0xff] %v2189_v9  ;;  %v2194_v10 = vld [vmem:[%s2147_s30 + $0x100] sm:$0xff]  ;;  %4364 = vst [vmem:[#allocation12_spill] sm:$0xff] %v2205_v13  ;;  %v2213_v15 = vld [vmem:[%s2147_s30 + $0x188] sm:$0xff]  ;;  %s2031_s4 = smov [#allocation5]  }
  0x3e   : > { %4361 = vst [vmem:[#allocation9_spill] sm:$0xff] %v2194_v10  ;;  %v2202_v12 = vld [vmem:[%s2147_s30 + $0x180] sm:$0xff]  ;;  %4366 = vst [vmem:[#allocation14_spill] sm:$0xff] %v2213_v15  ;;  %v2218_v16 = vld [vmem:[%s2147_s30 + $0x190] sm:$0xff]  ;;  %p1964_p13 = pnand %p1963_p11, %p4744_p12  ;;  %s1966_s5 = sshll.u32 %s2031_s4, 4  ;;  %s1967_s5 = int_to_ptr.vmem [resolvable:$false] %s1966_s5 }
  0x3f   : > { %4363 = vst [vmem:[#allocation11_spill] sm:$0xff] %v2202_v12  ;;  %4367 = vst [vmem:[#allocation15_spill] sm:$0xff] %v2218_v16  ;;  %v2221_v17 = vld [vmem:[%s2147_s30 + $0x110] sm:$0xff]  ;;  %v2226_v18 = vld [vmem:[%s2147_s30 + $0x118] sm:$0xff]  ;;  %s1968_s11 = scalar_lea.vmem %s1967_s5, 16384  ;;  %p1969_p5 = scmp.lt.s32.totalorder %s4174_s27, %s1967_s5 }
  0x40   : > { %4368 = vst [vmem:[#allocation16_spill] sm:$0xff] %v2221_v17  ;;  %4369 = vst [vmem:[#allocation17_spill] sm:$0xff] %v2226_v18  ;;  %v2229_v19 = vld [vmem:[%s2147_s30 + $0x98] sm:$0xff]  ;;  %v2234_v20 = vld [vmem:[%s2147_s30 + $0xa0] sm:$0xff]  ;;  %p1965_p4 = pneg %p1964_p13  ;;  %p1970_p7 = scmp.lt.s32.totalorder %s1968_s11, %s1962_s3 }
  0x41   : > { %212 = vadd.xlane.f32.xlu1 %v2170_v4  ;;  %210 = vadd.xlane.f32.xlu0 %v2173_v5  ;;  %4370 = vst [vmem:[#allocation18_spill] sm:$0xff] %v2229_v19  ;;  %4371 = vst [vmem:[#allocation19_spill] sm:$0xff] %v2234_v20  ;;  %v2237_v21 = vld [vmem:[%s2147_s30 + $0x198] sm:$0xff]  ;;  %v2242_v22 = vld [vmem:[%s2147_s30 + $0x1a0] sm:$0xff] }
  0x42   : > { %4372 = vst [vmem:[#allocation20_spill] sm:$0xff] %v2237_v21  ;;  %4373 = vst [vmem:[#allocation21_spill] sm:$0xff] %v2242_v22  ;;  %v2245_v23 = vld [vmem:[%s2147_s30 + $0x120] sm:$0xff]  ;;  %v2250_v24 = vld [vmem:[%s2147_s30 + $0x128] sm:$0xff]  ;;  %p1971_p8 = por %p1970_p7, %p1969_p5 }
  0x43   : > { %4374 = vst [vmem:[#allocation22_spill] sm:$0xff] %v2245_v23  ;;  %4375 = vst [vmem:[#allocation23_spill] sm:$0xff] %v2250_v24  ;;  %v159_v25 = vld [vmem:[%s2147_s30 + $0xa8] sm:$0xff]  ;;  %v160_v26 = vld [vmem:[%s2147_s30 + $0xb0] sm:$0xff] }
  0x44   : > { %v191_v27 = vld [vmem:[%s2147_s30 + $0x1a8] sm:$0xff]  ;;  %v192_v28 = vld [vmem:[%s2147_s30 + $0x1b0] sm:$0xff]  ;;  %v177_v30 = vld [vmem:[%s2147_s30 + $0x138] sm:$0xff]  ;;  %p1972_p10 = pnand %p1971_p8, %p1965_p4 }
  0x45   : > { %216 = vadd.xlane.f32.xlu1 %v2178_v6  ;;  %214 = vadd.xlane.f32.xlu0 %v2181_v7  ;;  %v176_v29 = vld [vmem:[%s2147_s30 + $0x130] sm:$0xff]  ;;  %v161_v31 = vld [vmem:[%s2147_s30 + $0xb8] sm:$0xff]  ;;  %v162_v32 = vld [vmem:[%s2147_s30 + $0xc0] sm:$0xff] }
  0x46   : > { %v193_v33 = vld [vmem:[%s2147_s30 + $0x1b8] sm:$0xff]  ;;  %v194_v34 = vld [vmem:[%s2147_s30 + $0x1c0] sm:$0xff]  ;;  %v163_v36 = vld [vmem:[%s2147_s30 + $0xc8] sm:$0xff] }
  0x47   : > { %v178_v35 = vld [vmem:[%s2147_s30 + $0x140] sm:$0xff]  ;;  %v147_v37 = vld [vmem:[%s2147_s30 + $0x48] sm:$0xff]  ;;  %v164_v40 = vld [vmem:[%s2147_s30 + $0xd0] sm:$0xff] }
  0x48   : > { %v195_v38 = vld [vmem:[%s2147_s30 + $0x1c8] sm:$0xff]  ;;  %v148_v41 = vld [vmem:[%s2147_s30 + $0x50] sm:$0xff]  ;;  %v165_v44 = vld [vmem:[%s2147_s30 + $0xd8] sm:$0xff] }
  0x49   : > { %234 = vadd.xlane.f32.xlu1 %v2186_v8  ;;  %218 = vadd.xlane.f32.xlu0 %v2189_v9  ;;  %v179_v39 = vld [vmem:[%s2147_s30 + $0x148] sm:$0xff]  ;;  %v196_v42 = vld [vmem:[%s2147_s30 + $0x1d0] sm:$0xff]  ;;  %v149_v45 = vld [vmem:[%s2147_s30 + $0x58] sm:$0xff] }
  0x4a   : > { %v180_v43 = vld [vmem:[%s2147_s30 + $0x150] sm:$0xff]  ;;  %v197_v46 = vld [vmem:[%s2147_s30 + $0x1d8] sm:$0xff]  ;;  %v166_v48 = vld [vmem:[%s2147_s30 + $0xe0] sm:$0xff] }
  0x4b   : > { %v181_v47 = vld [vmem:[%s2147_s30 + $0x158] sm:$0xff]  ;;  %v150_v49 = vld [vmem:[%s2147_s30 + $0x60] sm:$0xff]  ;;  %v167_v52 = vld [vmem:[%s2147_s30 + $0xe8] sm:$0xff] }
  0x4c   : > { %v198_v50 = vld [vmem:[%s2147_s30 + $0x1e0] sm:$0xff]  ;;  %v151_v53 = vld [vmem:[%s2147_s30 + $0x68] sm:$0xff]  ;;  %v168_v56 = vld [vmem:[%s2147_s30 + $0xf0] sm:$0xff] }
  0x4d   : > { %266 = vadd.xlane.f32.xlu1 %v2194_v10  ;;  %236 = vadd.xlane.f32.xlu0 %v2197_v11  ;;  %v182_v51 = vld [vmem:[%s2147_s30 + $0x160] sm:$0xff]  ;;  %v199_v54 = vld [vmem:[%s2147_s30 + $0x1e8] sm:$0xff]  ;;  %v152_v57 = vld [vmem:[%s2147_s30 + $0x70] sm:$0xff] }
  0x4e   : > { %v183_v55 = vld [vmem:[%s2147_s30 + $0x168] sm:$0xff]  ;;  %v200_v58 = vld [vmem:[%s2147_s30 + $0x1f0] sm:$0xff]  ;;  %v169_v60 = vld [vmem:[%s2147_s30 + $0xf8] sm:$0xff] }
  0x4f   : > { %v184_v59 = vld [vmem:[%s2147_s30 + $0x170] sm:$0xff]  ;;  %v153_v61 = vld [vmem:[%s2147_s30 + $0x78] sm:$0xff] }
  0x50   : > { %v201_v62 = vld [vmem:[%s2147_s30 + $0x1f8] sm:$0xff] }
  0x51   : > { %298 = vadd.xlane.f32.xlu1 %v2202_v12  ;;  %268 = vadd.xlane.f32.xlu0 %v2205_v13  ;;  %v185_v63 = vld [vmem:[%s2147_s30 + $0x178] sm:$0xff] }
  0x55   : > { %238 = vadd.xlane.f32.xlu1 %v2210_v14  ;;  %300 = vadd.xlane.f32.xlu0 %v2213_v15 }
  0x59   : > { %302 = vadd.xlane.f32.xlu1 %v2218_v16  ;;  %270 = vadd.xlane.f32.xlu0 %v2221_v17 }
  0x5d   : > { %272 = vadd.xlane.f32.xlu1 %v2226_v18  ;;  %240 = vadd.xlane.f32.xlu0 %v2229_v19 }
  0x61   : > { %242 = vadd.xlane.f32.xlu1 %v2234_v20  ;;  %304 = vadd.xlane.f32.xlu0 %v2237_v21 }
  0x65   : > { %306 = vadd.xlane.f32.xlu1 %v2242_v22  ;;  %274 = vadd.xlane.f32.xlu0 %v2245_v23 }
  0x69   : > { %276 = vadd.xlane.f32.xlu1 %v2250_v24  ;;  %244 = vadd.xlane.f32.xlu0 %v159_v25 }
  0x6d   : > { %246 = vadd.xlane.f32.xlu1 %v160_v26  ;;  %308 = vadd.xlane.f32.xlu0 %v191_v27 }
  0x71   : > { %310 = vadd.xlane.f32.xlu1 %v192_v28  ;;  %278 = vadd.xlane.f32.xlu0 %v176_v29 }
  0x75   : > { %280 = vadd.xlane.f32.xlu1 %v177_v30  ;;  %248 = vadd.xlane.f32.xlu0 %v161_v31  ;;  %v842_v31 = vlaneseq }
  0x79   : > { %250 = vadd.xlane.f32.xlu1 %v162_v32  ;;  %312 = vadd.xlane.f32.xlu0 %v193_v33 }
  0x7d   : > { %314 = vadd.xlane.f32.xlu1 %v194_v34  ;;  %282 = vadd.xlane.f32.xlu0 %v178_v35 }
  0x81   : > { %252 = vadd.xlane.f32.xlu1 %v163_v36  ;;  %220 = vadd.xlane.f32.xlu0 %v147_v37  ;;  %v2322_v36 = vand.u32 127, %v842_v31 }
  0x83   : > { %4376 = vst [vmem:[#allocation24_spill] sm:$0xff] %v2322_v36  ;;  %v897_v23 = vadd.s32 4294967232, %v2322_v36 }
  0x85   : > { %316 = vadd.xlane.f32.xlu1 %v195_v38  ;;  %284 = vadd.xlane.f32.xlu0 %v179_v39 }
  0x89   : > { %254 = vadd.xlane.f32.xlu1 %v164_v40  ;;  %222 = vadd.xlane.f32.xlu0 %v148_v41  ;;  %v2336_v41 = vshrl.u32 %v842_v31, 7 }
  0x8d   : > { %318 = vadd.xlane.f32.xlu1 %v196_v42  ;;  %286 = vadd.xlane.f32.xlu0 %v180_v43  ;;  %v855_v42 = vadd.s32 4294967280, %v2322_v36 }
  0x91   : > { %256 = vadd.xlane.f32.xlu1 %v165_v44  ;;  %224 = vadd.xlane.f32.xlu0 %v149_v45  ;;  %v862_v45 = vadd.s32 4294967272, %v2322_v36 }
  0x95   : > { %320 = vadd.xlane.f32.xlu1 %v197_v46  ;;  %288 = vadd.xlane.f32.xlu0 %v181_v47  ;;  %v848_v46 = vadd.s32 4294967288, %v2322_v36 }
  0x99   : > { %258 = vadd.xlane.f32.xlu1 %v166_v48  ;;  %226 = vadd.xlane.f32.xlu0 %v150_v49 }
  0x9d   : > { %322 = vadd.xlane.f32.xlu1 %v198_v50  ;;  %290 = vadd.xlane.f32.xlu0 %v182_v51  ;;  %v876_v50 = vadd.s32 4294967256, %v2322_v36  ;;  %v869_v51 = vadd.s32 4294967264, %v2322_v36 }
  0x9f   : > { %v2390_v31 = vsub.s32 %v869_v51, %v2336_v41 }
  0xa1   : > { %260 = vadd.xlane.f32.xlu1 %v167_v52  ;;  %228 = vadd.xlane.f32.xlu0 %v151_v53  ;;  %v2356_v53 = vsub.s32 %v855_v42, %v2336_v41 }
  0xa5   : > { %324 = vadd.xlane.f32.xlu1 %v199_v54  ;;  %292 = vadd.xlane.f32.xlu0 %v183_v55  ;;  %v2360_v54 = vsub.s32 %v2322_v36, %v2336_v41  ;;  %v2363_v55 = vsub.s32 %v862_v45, %v2336_v41  ;;  %v883_v45 = vadd.s32 4294967248, %v2322_v36 }
  0xa9   : > { %262 = vadd.xlane.f32.xlu1 %v168_v56  ;;  %230 = vadd.xlane.f32.xlu0 %v152_v57  ;;  %v2366_v56 = vsub.s32 %v848_v46, %v2336_v41 }
  0xad   : > { %326 = vadd.xlane.f32.xlu1 %v200_v58  ;;  %294 = vadd.xlane.f32.xlu0 %v184_v59 }
  0xb1   : > { %264 = vadd.xlane.f32.xlu1 %v169_v60  ;;  %232 = vadd.xlane.f32.xlu0 %v153_v61 }
  0xb5   : > { %328 = vadd.xlane.f32.xlu1 %v201_v62  ;;  %296 = vadd.xlane.f32.xlu0 %v185_v63 }
  0xc2   : > { %v2292_v25 = vpop.xlane.xlu1 %206  ;;  %v2294_v26 = vpop.xlane.xlu0 %202 }
  0xc3   : > { %vm332_vm0 = vcmp.gt.f32.partialorder %v2292_v25, 0.0  ;;  %vm330_vm1 = vcmp.gt.f32.partialorder %v2294_v26, 0.0 }
  0xc4   : > { %v396_v27 = vsel %vm332_vm0, %v2292_v25, 1.0  ;;  %v394_v28 = vsel %vm330_vm1, %v2294_v26, 1.0 }
  0xc5   : > { %1767 = vrsqrt.f32 %v394_v28  ;;  %v2387_v28 = vsub.s32 %v876_v50, %v2336_v41 }
  0xc6   : > { %v2304_v29 = vpop.xlane.xlu1 %208  ;;  %v2306_v30 = vpop.xlane.xlu0 %204  ;;  %1769 = vrsqrt.f32 %v396_v27 }
  0xc7   : > { %vm333_vm2 = vcmp.gt.f32.partialorder %v2304_v29, 0.0  ;;  %vm331_vm3 = vcmp.gt.f32.partialorder %v2306_v30, 0.0 }
  0xc8   : > { %v397_v32 = vsel %vm333_vm2, %v2304_v29, 1.0  ;;  %v395_v33 = vsel %vm331_vm3, %v2306_v30, 1.0 }
  0xc9   : > { %1771 = vrsqrt.f32 %v397_v32 }
  0xca   : > { %1773 = vrsqrt.f32 %v395_v33  ;;  %v2316_v34 = vpop.xlane.xlu1 %212  ;;  %v2318_v35 = vpop.xlane.xlu0 %210 }
  0xcb   : > { %vm335_vm4 = vcmp.gt.f32.partialorder %v2316_v34, 0.0  ;;  %vm334_vm5 = vcmp.gt.f32.partialorder %v2318_v35, 0.0 }
  0xcc   : > { %v399_v37 = vsel %vm335_vm4, %v2316_v34, 1.0  ;;  %v398_v38 = vsel %vm334_vm5, %v2318_v35, 1.0 }
  0xcd   : > { %1775 = vrsqrt.f32 %v399_v37  ;;  %v890_v37 = vadd.s32 4294967240, %v2322_v36 }
  0xce   : > { %1777 = vrsqrt.f32 %v398_v38  ;;  %v2330_v39 = vpop.xlane.xlu1 %216  ;;  %v2332_v40 = vpop.xlane.xlu0 %214 }
  0xcf   : > { %vm337_vm6 = vcmp.gt.f32.partialorder %v2330_v39, 0.0  ;;  %vm336_vm7 = vcmp.gt.f32.partialorder %v2332_v40, 0.0  ;;  %v2428_v24 = vsub.s32 %v890_v37, %v2336_v41  ;;  %v2442_v37 = vsub.s32 %v883_v45, %v2336_v41 }
  0xd0   : > { %v401_v43 = vsel %vm337_vm6, %v2330_v39, 1.0  ;;  %v400_v44 = vsel %vm336_vm7, %v2332_v40, 1.0 }
  0xd1   : > { %1779 = vrsqrt.f32 %v401_v43  ;;  %4383 = vst [vmem:[#allocation31_spill] sm:$0xff] %v2428_v24  ;;  %4384 = vst [vmem:[#allocation32_spill] sm:$0xff] %v2442_v37 }
  0xd2   : > { %1781 = vrsqrt.f32 %v400_v44  ;;  %v2347_v47 = vpop.xlane.xlu1 %234  ;;  %v2349_v48 = vpop.xlane.xlu0 %218 }
  0xd3   : > { %4377 = vst [vmem:[#allocation25_spill] sm:$0xff] %v2347_v47  ;;  %4378 = vst [vmem:[#allocation26_spill] sm:$0xff] %v2349_v48  ;;  %v1768_v49 = vpop.eup %1767  ;;  %vm346_vm8 = vcmp.gt.f32.partialorder %v2347_v47, 0.0  ;;  %vm338_vm9 = vcmp.gt.f32.partialorder %v2349_v48, 0.0 }
  0xd4   : > { %v1770_v52 = vpop.eup %1769  ;;  %v2370_v58 = vsel %vm330_vm1, %v1768_v49, 0.0  ;;  %v410_v59 = vsel %vm346_vm8, %v2347_v47, 1.0  ;;  %v402_v60 = vsel %vm338_vm9, %v2349_v48, 1.0  ;;  %vm4265_vm1 = vcmask 392512  }
  0xd5   : > { %v2384_v27 = vsel %vm332_vm0, %v1770_v52, 0.0  ;;  %1783 = vrsqrt.f32 %v402_v60  ;;  %v847_v38 = vrot.slane %v2370_v58, %v2360_v54 }
  0xd6   : > { %v1772_v57 = vpop.eup %1771  ;;  %v2378_v61 = vpop.xlane.xlu1 %266  ;;  %1785 = vrsqrt.f32 %v410_v59  ;;  %v859_v44 = vrot.slane %v2384_v27, %v2356_v53 }
  0xd7   : > { %4379 = vst [vmem:[#allocation27_spill] sm:$0xff] %v2378_v61  ;;  %v2380_v62 = vpop.xlane.xlu0 %236  ;;  %v1774_v63 = vpop.eup %1773  ;;  %v2394_v32 = vsel %vm333_vm2, %v1772_v57, 0.0  ;;  %vm362_vm13 = vcmp.gt.f32.partialorder %v2378_v61, 0.0 }
  0xd8   : > { %4380 = vst [vmem:[#allocation28_spill] sm:$0xff] %v2380_v62  ;;  %v2398_v33 = vsel %vm331_vm3, %v1774_v63, 0.0  ;;  %vm347_vm15 = vcmp.gt.f32.partialorder %v2380_v62, 0.0  ;;  %v866_v51 = vrot.slane %v2394_v32, %v2363_v55 }
  0xd9   : > { %v852_v42 = vrot.slane %v2398_v33, %v2366_v56  ;;  %v411_v59 = vsel %vm347_vm15, %v2380_v62, 1.0 }
  0xda   : > { %v1776_v43 = vpop.eup %1775  ;;  %v2410_v46 = vpop.xlane.xlu1 %298  ;;  %1787 = vrsqrt.f32 %v411_v59 }
  0xdb   : > { %4381 = vst [vmem:[#allocation29_spill] sm:$0xff] %v2410_v46  ;;  %v2412_v49 = vpop.xlane.xlu0 %268  ;;  %v1778_v50 = vpop.eup %1777  ;;  %v854_v52 = vsel %vm853_vm10, %v852_v42, %v847_v38  ;;  %v2419_v57 = vsel %vm335_vm4, %v1776_v43, 0.0  ;;  %v426_v38 = vsel %vm362_vm13, %v2378_v61, 1.0  ;;  %vm378_vm0 = vcmp.gt.f32.partialorder %v2410_v46, 0.0 }
  0xdc   : > { %4382 = vst [vmem:[#allocation30_spill] sm:$0xff] %v2412_v49  ;;  %v861_v60 = vsel %vm860_vm11, %v859_v44, %v854_v52  ;;  %v880_v63 = vrot.slane %v2419_v57, %v2387_v28  ;;  %v2436_v43 = vsel %vm334_vm5, %v1778_v50, 0.0  ;;  %1789 = vrsqrt.f32 %v426_v38 }
  0xdd   : > { %v868_v42 = vsel %vm867_vm12, %v866_v51, %v861_v60  ;;  %v873_v52 = vrot.slane %v2436_v43, %v2390_v31  ;;  %v442_v21 = vsel %vm378_vm0, %v2410_v46, 1.0  ;;  %vm363_vm2 = vcmp.gt.f32.partialorder %v2412_v49, 0.0 }
  0xde   : > { %v1780_v44 = vpop.eup %1779  ;;  %v2445_v22 = vpop.xlane.xlu1 %238  ;;  %vm4277_vm4 = vcmask 458112   ;;  %vm4270_vm5 = vcmask 523712   ;;  %1791 = vrsqrt.f32 %v442_v21 }
  0xdf   : > { %4385 = vst [vmem:[#allocation33_spill] sm:$0xff] %v2445_v22  ;;  %v2447_v51 = vpop.xlane.xlu0 %300  ;;  %v1782_v60 = vpop.eup %1781  ;;  %v2451_v50 = vsel %vm337_vm6, %v1780_v44, 0.0  ;;  %v875_v59 = vsel %vm4279_vm14, %v873_v52, %v868_v42  ;;  %vm348_vm3 = vcmp.gt.f32.partialorder %v2445_v22, 0.0  ;;  %v2469_v42 = vsub.s32 %v897_v23, %v2336_v41 }
  0xe0   : > { %4386 = vst [vmem:[#allocation34_spill] sm:$0xff] %v2447_v51  ;;  %v894_v45 = vrot.slane %v2451_v50, %v2428_v24  ;;  %v882_v20 = vsel %vm4265_vm1, %v880_v63, %v875_v59  ;;  %v2464_v44 = vsel %vm336_vm7, %v1782_v60, 0.0  ;;  %v427_v63 = vsel %vm363_vm2, %v2412_v49, 1.0 }
  0xe1   : > { %v887_v38 = vrot.slane %v2464_v44, %v2442_v37  ;;  %4387 = vst [vmem:[#allocation35_spill] sm:$0xff] %v2469_v42  ;;  %v412_v60 = vsel %vm348_vm3, %v2445_v22, 1.0  ;;  %vm379_vm6 = vcmp.gt.f32.partialorder %v2447_v51, 0.0  ;;  %1793 = vrsqrt.f32 %v427_v63 }
  0xe2   : > { %v2471_v52 = vpop.xlane.xlu1 %302  ;;  %v1784_v59 = vpop.eup %1783  ;;  %vm4273_vm1 = vcmask 589312   ;;  %1795 = vrsqrt.f32 %v412_v60  ;;  %v443_v16 = vsel %vm379_vm6, %v2447_v51, 1.0 }
  0xe3   : > { %4388 = vst [vmem:[#allocation36_spill] sm:$0xff] %v2471_v52  ;;  %v2473_v19 = vpop.xlane.xlu0 %270  ;;  %v889_v18 = vsel %vm4277_vm4, %v887_v38, %v882_v20  ;;  %vm380_vm7 = vcmp.gt.f32.partialorder %v2471_v52, 0.0  ;;  %v1786_v17 = vpop.eup %1785  ;;  %v2487_v21 = vsel %vm338_vm9, %v1784_v59, 0.0  ;;  %1797 = vrsqrt.f32 %v443_v16 }
  0xe4   : > { %4389 = vst [vmem:[#allocation37_spill] sm:$0xff] %v2473_v19  ;;  %v896_v23 = vsel %vm4270_vm5, %v894_v45, %v889_v18  ;;  %v901_v20 = vrot.slane %v2487_v21, %v2469_v42  ;;  %v444_v18 = vsel %vm380_vm7, %v2471_v52, 1.0  ;;  %vm364_vm9 = vcmp.gt.f32.partialorder %v2473_v19, 0.0 }
  0xe5   : > { %v2505_v45 = vsel %vm346_vm8, %v1786_v17, 0.0  ;;  %1799 = vrsqrt.f32 %v444_v18  ;;  %v428_v60 = vsel %vm364_vm9, %v2473_v19, 1.0  ;;  %v925_v19 = vadd.s32 4294967200, %v2322_v36 }
  0xe6   : > { %v2492_v24 = vpop.xlane.xlu1 %272  ;;  %v2508_v38 = vsel %vm4273_vm1, %v901_v20, %v896_v23  ;;  %1801 = vrsqrt.f32 %v428_v60  ;;  %v956_v20 = vrot.slane %v2505_v45, %v2360_v54 }
  0xe7   : > { %4390 = vst [vmem:[#allocation38_spill] sm:$0xff] %v2492_v24  ;;  %v2494_v15 = vpop.xlane.xlu0 %240  ;;  %vm365_vm5 = vcmp.gt.f32.partialorder %v2492_v24, 0.0  ;;  %4392 = vst [vmem:[#allocation40_spill] sm:$0xff] %v2508_v38  ;;  %v1788_v63 = vpop.eup %1787 }
  0xe8   : > { %4391 = vst [vmem:[#allocation39_spill] sm:$0xff] %v2494_v15  ;;  %v429_v16 = vsel %vm365_vm5, %v2492_v24, 1.0  ;;  %v2522_v17 = vsel %vm347_vm15, %v1788_v63, 0.0  ;;  %vm349_vm8 = vcmp.gt.f32.partialorder %v2494_v15, 0.0 }
  0xe9   : > { %v1790_v23 = vpop.eup %1789  ;;  %v960_v18 = vrot.slane %v2522_v17, %v2366_v56  ;;  %1803 = vrsqrt.f32 %v429_v16  ;;  %v413_v38 = vsel %vm349_vm8, %v2494_v15, 1.0  ;;  %v939_v15 = vadd.s32 4294967184, %v2322_v36 }
  0xea   : > { %v2516_v59 = vpop.xlane.xlu1 %242  ;;  %1805 = vrsqrt.f32 %v413_v38 }
  0xeb   : > { %4393 = vst [vmem:[#allocation41_spill] sm:$0xff] %v2516_v59  ;;  %v2518_v42 = vpop.xlane.xlu0 %304  ;;  %vm350_vm1 = vcmp.gt.f32.partialorder %v2516_v59, 0.0  ;;  %v961_v63 = vsel %vm853_vm10, %v960_v18, %v956_v20  ;;  %v1792_v13 = vpop.eup %1791  ;;  %v2548_v20 = vsel %vm362_vm13, %v1790_v23, 0.0 }
  0xec   : > { %4394 = vst [vmem:[#allocation42_spill] sm:$0xff] %v2518_v42  ;;  %vm381_vm15 = vcmp.gt.f32.partialorder %v2518_v42, 0.0  ;;  %v414_v60 = vsel %vm350_vm1, %v2516_v59, 1.0  ;;  %v1035_v62 = vrot.slane %v2548_v20, %v2360_v54 }
  0xed   : > { %1807 = vrsqrt.f32 %v414_v60  ;;  %v445_v16 = vsel %vm381_vm15, %v2518_v42, 1.0  ;;  %v2672_v42 = vsub.s32 %v925_v19, %v2336_v41 }
  0xee   : > { %v2538_v37 = vpop.xlane.xlu1 %306  ;;  %1809 = vrsqrt.f32 %v445_v16  ;;  %v1794_v38 = vpop.eup %1793 }
  0xef   : > { %v2540_v14 = vpop.xlane.xlu0 %274  ;;  %vm382_vm4 = vcmp.gt.f32.partialorder %v2538_v37, 0.0  ;;  %v2556_v60 = vsel %vm363_vm2, %v1794_v38, 0.0  ;;  %v1796_v16 = vpop.eup %1795  ;;  %v2571_v38 = vsel %vm378_vm0, %v1792_v13, 0.0 }
  0xf0   : > { %v446_v18 = vsel %vm382_vm4, %v2538_v37, 1.0  ;;  %vm366_vm14 = vcmp.gt.f32.partialorder %v2540_v14, 0.0  ;;  %4395 = vst [vmem:[#allocation43_spill] sm:$0xff] %v2556_v60  ;;  %v1039_v10 = vrot.slane %v2556_v60, %v2366_v56  ;;  %4396 = vst [vmem:[#allocation44_spill] sm:$0xff] %v2571_v38  ;;  %v1798_v49 = vpop.eup %1797  ;;  %v1114_v46 = vrot.slane %v2571_v38, %v2360_v54 }
  0xf1   : > { %1811 = vrsqrt.f32 %v446_v18  ;;  %v430_v12 = vsel %vm366_vm14, %v2540_v14, 1.0  ;;  %v2575_v18 = vsel %vm348_vm3, %v1796_v16, 0.0  ;;  %v2583_v60 = vsel %vm379_vm6, %v1798_v49, 0.0 }
  0xf2   : > { %v2561_v11 = vpop.xlane.xlu1 %276  ;;  %1813 = vrsqrt.f32 %v430_v12  ;;  %4397 = vst [vmem:[#allocation45_spill] sm:$0xff] %v2575_v18  ;;  %v1040_v61 = vsel %vm853_vm10, %v1039_v10, %v1035_v62  ;;  %v965_v9 = vrot.slane %v2575_v18, %v2356_v53  ;;  %4398 = vst [vmem:[#allocation46_spill] sm:$0xff] %v2583_v60  ;;  %v1800_v22 = vpop.eup %1799  ;;  %v1118_v10 = vrot.slane %v2583_v60, %v2366_v56 }
  0xf3   : > { %v2563_v23 = vpop.xlane.xlu0 %244  ;;  %vm367_vm13 = vcmp.gt.f32.partialorder %v2561_v11, 0.0  ;;  %v1802_v62 = vpop.eup %1801  ;;  %v2599_v49 = vsel %vm380_vm7, %v1800_v22, 0.0  ;;  %v904_v22 = vadd.s32 4294967224, %v2322_v36  ;;  %vm4421_vm3 = vcmask 392512  }
  0xf4   : > { %v431_v12 = vsel %vm367_vm13, %v2561_v11, 1.0  ;;  %v966_v51 = vsel %vm860_vm11, %v965_v9, %v961_v63  ;;  %4400 = vst [vmem:[#allocation48_spill] sm:$0xff] %v2599_v49  ;;  %v1119_v48 = vsel %vm853_vm10, %v1118_v10, %v1114_v46  ;;  %v1123_v47 = vrot.slane %v2599_v49, %v2356_v53 }
  0xf5   : > { %1815 = vrsqrt.f32 %v431_v12  ;;  %v2606_v54 = vsel %vm364_vm9, %v1802_v62, 0.0  ;;  %v911_v10 = vadd.s32 4294967216, %v2322_v36  ;;  %vm4411_vm10 = vcmask 326912  }
  0xf6   : > { %v2588_v13 = vpop.xlane.xlu1 %246  ;;  %v1804_v18 = vpop.eup %1803  ;;  %4401 = vst [vmem:[#allocation49_spill] sm:$0xff] %v2606_v54  ;;  %v1044_v46 = vrot.slane %v2606_v54, %v2356_v53  ;;  %v1124_v62 = vsel %vm860_vm11, %v1123_v47, %v1119_v48  ;;  %v932_v47 = vadd.s32 4294967192, %v2322_v36  ;;  %v588_v48 = vmul.f32 %v2384_v27, %v2384_v27 }
  0xf7   : > { %4399 = vst [vmem:[#allocation47_spill] sm:$0xff] %v2588_v13  ;;  %v2590_v16 = vpop.xlane.xlu0 %308  ;;  %v2610_v56 = vsel %vm365_vm5, %v1804_v18, 0.0  ;;  %v1806_v12 = vpop.eup %1805  ;;  %v918_v18 = vadd.s32 4294967208, %v2322_v36  ;;  %vm351_vm7 = vcmp.gt.f32.partialorder %v2563_v23, 0.0 }
  0xf8   : > { %4402 = vst [vmem:[#allocation50_spill] sm:$0xff] %v2610_v56  ;;  %v1049_v24 = vrot.slane %v2610_v56, %v2363_v55  ;;  %v1045_v60 = vsel %vm860_vm11, %v1044_v46, %v1040_v61  ;;  %v2628_v13 = vsel %vm349_vm8, %v1806_v12, 0.0  ;;  %v2643_v61 = vsub.s32 %v904_v22, %v2336_v41  ;;  %vm4415_vm11 = vmmov %vm4411_vm10 }
  0xf9   : > { %4403 = vst [vmem:[#allocation51_spill] sm:$0xff] %v2628_v13  ;;  %v586_v46 = vmul.f32 %v2370_v58, %v2370_v58 }
  0xfa   : > { %v2612_v9 = vpop.xlane.xlu1 %310  ;;  %v1808_v52 = vpop.eup %1807  ;;  %v1050_v56 = vsel %vm867_vm12, %v1049_v24, %v1045_v60  ;;  %4406 = vst [vmem:[#allocation54_spill] sm:$0xff] %v2643_v61  ;;  %v2661_v61 = vsub.s32 %v911_v10, %v2336_v41  ;;  %v2682_v10 = vmul.f32 %v2370_v58, %v2157_v1  ;;  %v2703_v58 = vsub.s32 %v939_v15, %v2336_v41 }
  0xfb   : > { %v2614_v63 = vpop.xlane.xlu0 %278  ;;  %v1810_v49 = vpop.eup %1809  ;;  %v2632_v53 = vsel %vm350_vm1, %v1808_v52, 0.0  ;;  %v970_v52 = vrot.slane %v2628_v13, %v2363_v55  ;;  %vm384_vm0 = vcmp.gt.f32.partialorder %v2612_v9, 0.0 }
  0xfc   : > { %4404 = vst [vmem:[#allocation52_spill] sm:$0xff] %v2632_v53  ;;  %v975_v59 = vrot.slane %v2632_v53, %v2390_v31  ;;  %v2654_v60 = vsel %vm381_vm15, %v1810_v49, 0.0  ;;  %v2668_v53 = vmul.f32 %v2384_v27, %v2154_v0  ;;  %v2675_v49 = vsub.s32 %v932_v47, %v2336_v41  ;;  %4410 = vst [vmem:[#allocation58_spill] sm:$0xff] %v2682_v10 }
  0xfd   : > { %v971_v13 = vsel %vm867_vm12, %v970_v52, %v966_v51  ;;  %v1128_v0 = vrot.slane %v2654_v60, %v2363_v55  ;;  %v2694_v51 = vmul.f32 %v586_v46, %v2294_v26  ;;  %4413 = vst [vmem:[#allocation60_spill] sm:$0xff] %v2703_v58  ;;  %v589_v55 = vmul.f32 %v2394_v32, %v2394_v32  ;;  %v4480_v58 = vld [vmem:[#allocation16_spill] sm:$0xff] }
  0xfe   : > { %v2638_v54 = vpop.xlane.xlu1 %280  ;;  %v1812_v12 = vpop.eup %1811  ;;  %4407 = vst [vmem:[#allocation55_spill] sm:$0xff] %v2668_v53  ;;  %4408 = vst [vmem:[#allocation56_spill] sm:$0xff] %v2675_v49  ;;  %v587_v26 = vmul.f32 %v2398_v33, %v2398_v33  ;;  %vm368_vm1 = vcmp.gt.f32.partialorder %v2614_v63, 0.0 }
  0xff   : > { %v2640_v38 = vpop.xlane.xlu0 %248  ;;  %v1814_v24 = vpop.eup %1813  ;;  %v2658_v22 = vsel %vm382_vm4, %v1812_v12, 0.0  ;;  %v2678_v12 = vmul.f32 %v588_v48, %v2292_v25  ;;  %4412 = vst [vmem:[#allocation59_spill] sm:$0xff] %v2694_v51  ;;  %vm369_vm2 = vcmp.gt.f32.partialorder %v2638_v54, 0.0 }
 0x100   : > { %4405 = vst [vmem:[#allocation53_spill] sm:$0xff] %v2640_v38  ;;  %v2664_v38 = vsub.s32 %v918_v18, %v2336_v41  ;;  %v2685_v18 = vsel %vm4411_vm10, %v975_v59, %v971_v13  ;;  %v1133_v25 = vrot.slane %v2658_v22, %v2390_v31  ;;  %v2700_v1 = vsel %vm366_vm14, %v1814_v24, 0.0 }
 0x101   : > { %4409 = vst [vmem:[#allocation57_spill] sm:$0xff] %v2678_v12  ;;  %v2709_v59 = vmul.f32 %v2394_v32, %v2162_v2  ;;  %v1129_v13 = vsel %vm867_vm12, %v1128_v0, %v1124_v62  ;;  %v1054_v15 = vrot.slane %v2700_v1, %v2390_v31  ;;  %vm383_vm14 = vcmp.gt.f32.partialorder %v2590_v16, 0.0  ;;  %vm4417_vm12 = vmmov %vm4411_vm10 }
 0x102   : > { %v2689_v27 = vpop.xlane.xlu1 %250  ;;  %v1816_v47 = vpop.eup %1815  ;;  %v2715_v48 = vsel %vm4415_vm11, %v1133_v25, %v1129_v13  ;;  %v2723_v2 = vmul.f32 %v2398_v33, %v2165_v3  ;;  %v591_v32 = vmul.f32 %v2419_v57, %v2419_v57  ;;  %v447_v46 = vsel %vm383_vm14, %v2590_v16, 1.0 }
 0x103   : > { %v2691_v19 = vpop.xlane.xlu0 %312  ;;  %4414 = vst [vmem:[#allocation61_spill] sm:$0xff] %v2709_v59  ;;  %v2729_v62 = vsel %vm367_vm13, %v1816_v47, 0.0  ;;  %v590_v24 = vmul.f32 %v2436_v43, %v2436_v43  ;;  %v1055_v3 = vsel %vm4417_vm12, %v1054_v15, %v1050_v56  ;;  %v448_v0 = vsel %vm384_vm0, %v2612_v9, 1.0  ;;  %vm4462_vm13 = vmmov %vm4421_vm3  ;;  %v4465_v59 = vld [vmem:[#allocation33_spill] sm:$0xff] }
 0x104   : > { %4416 = vst [vmem:[#allocation62_spill] sm:$0xff] %v2723_v2  ;;  %v1059_v33 = vrot.slane %v2729_v62, %v2387_v28  ;;  %v593_v25 = vmul.f32 %v2451_v50, %v2451_v50  ;;  %1817 = vrsqrt.f32 %v447_v46  ;;  %v2751_v13 = vmul.f32 %v589_v55, %v2304_v29 }
 0x105   : > { %v2754_v56 = vmul.f32 %v587_v26, %v2306_v30  ;;  %v2758_v47 = vmul.f32 %v2419_v57, %v2170_v4  ;;  %v2764_v12 = vmul.f32 %v591_v32, %v2316_v34  ;;  %1819 = vrsqrt.f32 %v448_v0 }
 0x106   : > { %v2734_v31 = vpop.xlane.xlu1 %314  ;;  %4418 = vst [vmem:[#allocation63_spill] sm:$0xff] %v2751_v13  ;;  %v2761_v15 = vsel %vm4421_vm3, %v1059_v33, %v1055_v3  ;;  %v432_v46 = vsel %vm368_vm1, %v2614_v63, 1.0  ;;  %v433_v29 = vsel %vm369_vm2, %v2638_v54, 1.0  ;;  %v2777_v4 = vmul.f32 %v590_v24, %v2318_v35 }
 0x107   : > { %v2736_v52 = vpop.xlane.xlu0 %282  ;;  %4419 = vst [vmem:[#allocation64_spill] sm:$0xff] %v2754_v56  ;;  %4420 = vst [vmem:[#allocation65_spill] sm:$0xff] %v2758_v47  ;;  %v2781_v34 = vmul.f32 %v2436_v43, %v2173_v5  ;;  %v592_v57 = vmul.f32 %v2464_v44, %v2464_v44  ;;  %1821 = vrsqrt.f32 %v432_v46  ;;  %v2786_v26 = vmul.f32 %v593_v25, %v2330_v39  ;;  %v4430_v25 = vld [vmem:[#allocation44_spill] sm:$0xff]  ;;  %v4431_v46 = vld [vmem:[#allocation47_spill] sm:$0xff] }
 0x108   : > { %4422 = vst [vmem:[#allocation66_spill] sm:$0xff] %v2764_v12  ;;  %4423 = vst [vmem:[#allocation67_spill] sm:$0xff] %v2777_v4  ;;  %v2790_v32 = vmul.f32 %v2451_v50, %v2178_v6  ;;  %v2794_v3 = vmul.f32 %v2464_v44, %v2181_v7  ;;  %1823 = vrsqrt.f32 %v433_v29  ;;  %v602_v5 = vmul.f32 %v2505_v45, %v2505_v45  ;;  %v4446_v56 = vld [vmem:[#allocation43_spill] sm:$0xff]  ;;  %v4461_v47 = vld [vmem:[#allocation48_spill] sm:$0xff] }
 0x109   : > { %4424 = vst [vmem:[#allocation68_spill] sm:$0xff] %v2781_v34  ;;  %4425 = vst [vmem:[#allocation69_spill] sm:$0xff] %v2786_v26  ;;  %vm385_vm4 = vcmp.gt.f32.partialorder %v2691_v19, 0.0  ;;  %vm386_vm5 = vcmp.gt.f32.partialorder %v2734_v31, 0.0  ;;  %vm370_vm6 = vcmp.gt.f32.partialorder %v2736_v52, 0.0  ;;  %v594_v35 = vmul.f32 %v2487_v21, %v2487_v21  ;;  %v4434_v26 = vld [vmem:[#allocation26_spill] sm:$0xff] }
 0x10a   : > { %v2772_v30 = vpop.xlane.xlu1 %252  ;;  %4426 = vst [vmem:[#allocation70_spill] sm:$0xff] %v2790_v32  ;;  %4427 = vst [vmem:[#allocation71_spill] sm:$0xff] %v2794_v3  ;;  %v449_v6 = vsel %vm385_vm4, %v2691_v19, 1.0  ;;  %v450_v7 = vsel %vm386_vm5, %v2734_v31, 1.0  ;;  %v434_v39 = vsel %vm370_vm6, %v2736_v52, 1.0  ;;  %v2817_v44 = vmul.f32 %v592_v57, %v2332_v40  ;;  %v4432_v57 = vld [vmem:[#allocation25_spill] sm:$0xff] }
 0x10b   : > { %v2774_v55 = vpop.xlane.xlu0 %220  ;;  %v618_v24 = vmul.f32 %v2548_v20, %v2548_v20  ;;  %1825 = vrsqrt.f32 %v449_v6  ;;  %v2824_v33 = vmul.f32 %v2505_v45, %v2186_v8  ;;  %v603_v0 = vmul.f32 %v2522_v17, %v2522_v17  ;;  %v4436_v45 = vld [vmem:[#allocation8_spill] sm:$0xff] }
 0x10c   : > { %4428 = vst [vmem:[#allocation72_spill] sm:$0xff] %v2817_v44  ;;  %1827 = vrsqrt.f32 %v450_v7  ;;  %v634_v40 = vmul.f32 %v4430_v25, %v4430_v25  ;;  %vm352_vm8 = vcmp.gt.f32.partialorder %v4431_v46, 0.0  ;;  %v946_v29 = vadd.s32 4294967176, %v2322_v36  ;;  %v4475_v36 = vld [vmem:[#allocation15_spill] sm:$0xff] }
 0x10d   : > { %4429 = vst [vmem:[#allocation73_spill] sm:$0xff] %v2824_v33  ;;  %1829 = vrsqrt.f32 %v434_v39  ;;  %v2834_v6 = vmul.f32 %v602_v5, %v4432_v57  ;;  %v2837_v8 = vmul.f32 %v594_v35, %v4434_v26  ;;  %v2841_v44 = vmul.f32 %v2487_v21, %v4436_v45  ;;  %v4438_v39 = vld [vmem:[#allocation27_spill] sm:$0xff]  ;;  %v4440_v5 = vld [vmem:[#allocation9_spill] sm:$0xff]  ;;  %v4442_v26 = vld [vmem:[#allocation28_spill] sm:$0xff] }
 0x10e   : > { %v2812_v43 = vpop.xlane.xlu1 %316  ;;  %v415_v7 = vsel %vm351_vm7, %v2563_v23, 1.0  ;;  %v2851_v13 = vmul.f32 %v618_v24, %v4438_v39  ;;  %v2855_v57 = vmul.f32 %v2548_v20, %v4440_v5  ;;  %v2862_v35 = vmul.f32 %v603_v0, %v4442_v26  ;;  %v4444_v45 = vld [vmem:[#allocation10_spill] sm:$0xff]  ;;  %v4447_v5 = vld [vmem:[#allocation29_spill] sm:$0xff]  ;;  %v4478_v33 = vld [vmem:[#allocation36_spill] sm:$0xff] }
 0x10f   : > { %v2814_v50 = vpop.xlane.xlu0 %284  ;;  %vm387_vm9 = vcmp.gt.f32.partialorder %v2812_v43, 0.0  ;;  %4433 = vst [vmem:[#allocation44_spill] sm:$0xff] %v2834_v6  ;;  %4435 = vst [vmem:[#allocation47_spill] sm:$0xff] %v2837_v8  ;;  %v2866_v8 = vmul.f32 %v2522_v17, %v4444_v45  ;;  %v619_v24 = vmul.f32 %v4446_v56, %v4446_v56  ;;  %v416_v20 = vsel %vm352_vm8, %v4431_v46, 1.0  ;;  %v4452_v17 = vld [vmem:[#allocation12_spill] sm:$0xff] }
 0x110   : > { %4437 = vst [vmem:[#allocation25_spill] sm:$0xff] %v2841_v44  ;;  %4439 = vst [vmem:[#allocation26_spill] sm:$0xff] %v2851_v13  ;;  %v451_v21 = vsel %vm387_vm9, %v2812_v43, 1.0  ;;  %vm371_vm15 = vcmp.gt.f32.partialorder %v2814_v50, 0.0  ;;  %v2874_v13 = vmul.f32 %v634_v40, %v4447_v5  ;;  %1831 = vrsqrt.f32 %v415_v7  ;;  %v4454_v7 = vld [vmem:[#allocation45_spill] sm:$0xff] }
 0x111   : > { %4441 = vst [vmem:[#allocation8_spill] sm:$0xff] %v2855_v57  ;;  %4443 = vst [vmem:[#allocation27_spill] sm:$0xff] %v2862_v35  ;;  %v1818_v39 = vpop.eup %1817  ;;  %v4449_v57 = vld [vmem:[#allocation11_spill] sm:$0xff]  ;;  %v2881_v0 = vsub.s32 %v946_v29, %v2336_v41  ;;  %v2885_v26 = vmul.f32 %v4446_v56, %v4452_v17  ;;  %1833 = vrsqrt.f32 %v451_v21  ;;  %v435_v40 = vsel %vm371_vm15, %v2814_v50, 1.0  ;;  %v4456_v17 = vld [vmem:[#allocation30_spill] sm:$0xff] }
 0x112   : > { %v2846_v12 = vpop.xlane.xlu1 %254  ;;  %4445 = vst [vmem:[#allocation9_spill] sm:$0xff] %v2866_v8  ;;  %4448 = vst [vmem:[#allocation28_spill] sm:$0xff] %v2874_v13  ;;  %v2878_v51 = vmul.f32 %v4430_v25, %v4449_v57  ;;  %v2889_v45 = vsel %vm383_vm14, %v1818_v39, 0.0  ;;  %v1820_v25 = vpop.eup %1819  ;;  %v604_v29 = vmul.f32 %v4454_v7, %v4454_v7  ;;  %1835 = vrsqrt.f32 %v416_v20  ;;  %v4470_v35 = vld [vmem:[#allocation50_spill] sm:$0xff] }
 0x113   : > { %v2848_v4 = vpop.xlane.xlu0 %222  ;;  %4451 = vst [vmem:[#allocation43_spill] sm:$0xff] %v2881_v0  ;;  %4453 = vst [vmem:[#allocation29_spill] sm:$0xff] %v2885_v26  ;;  %v1138_v56 = vrot.slane %v2889_v45, %v2387_v28  ;;  %v2901_v57 = vadd.s32 8, %v2336_v41  ;;  %v2904_v21 = vmul.f32 %v619_v24, %v4456_v17  ;;  %v4458_v26 = vld [vmem:[#allocation13_spill] sm:$0xff]  ;;  %v2914_v20 = vsel %vm384_vm0, %v1820_v25, 0.0 }
 0x114   : > { %4450 = vst [vmem:[#allocation10_spill] sm:$0xff] %v2878_v51  ;;  %v1822_v39 = vpop.eup %1821  ;;  %v2908_v13 = vmul.f32 %v4454_v7, %v4458_v26  ;;  %v4460_v51 = vld [vmem:[#allocation46_spill] sm:$0xff]  ;;  %v636_v34 = vmul.f32 %v4461_v47, %v4461_v47  ;;  %v4463_v17 = vld [vmem:[#allocation53_spill] sm:$0xff]  ;;  %1837 = vrsqrt.f32 %v435_v40  ;;  %v4464_v26 = vld [vmem:[#allocation32_spill] sm:$0xff]  ;;  %vm354_vm11 = vcmp.gt.f32.partialorder %v2689_v27, 0.0 }
 0x115   : > { %4455 = vst [vmem:[#allocation11_spill] sm:$0xff] %v2901_v57  ;;  %4457 = vst [vmem:[#allocation12_spill] sm:$0xff] %v2904_v21  ;;  %v635_v44 = vmul.f32 %v4460_v51, %v4460_v51  ;;  %v1824_v3 = vpop.eup %1823  ;;  %v1139_v24 = vsel %vm4462_vm13, %v1138_v56, %v2715_v48  ;;  %vm353_vm10 = vcmp.gt.f32.partialorder %v4463_v17, 0.0  ;;  %v1143_v7 = vrot.slane %v2914_v20, %v4464_v26  ;;  %v4467_v48 = vld [vmem:[#allocation14_spill] sm:$0xff]  ;;  %v4469_v40 = vld [vmem:[#allocation49_spill] sm:$0xff] }
 0x116   : > { %v2894_v5 = vpop.xlane.xlu1 %318  ;;  %4459 = vst [vmem:[#allocation45_spill] sm:$0xff] %v2908_v13  ;;  %v2927_v21 = vsel %vm368_vm1, %v1822_v39, 0.0  ;;  %v2931_v25 = vsel %vm369_vm2, %v1824_v3, 0.0  ;;  %v2935_v53 = vmul.f32 %v604_v29, %v4465_v59  ;;  %v2939_v56 = vmul.f32 %v4460_v51, %v4467_v48  ;;  %v4472_v57 = vld [vmem:[#allocation31_spill] sm:$0xff] }
 0x117   : > { %v2916_v32 = vpop.xlane.xlu0 %286  ;;  %v620_v2 = vmul.f32 %v4469_v40, %v4469_v40  ;;  %v1064_v39 = vrot.slane %v2927_v21, %v4464_v26  ;;  %v621_v3 = vmul.f32 %v4470_v35, %v4470_v35  ;;  %vm4471_vm14 = vcmask 458112  }
 0x118   : > { %4466 = vst [vmem:[#allocation30_spill] sm:$0xff] %v2935_v53  ;;  %4468 = vst [vmem:[#allocation13_spill] sm:$0xff] %v2939_v56  ;;  %v1826_v10 = vpop.eup %1825  ;;  %v1144_v6 = vsel %vm4471_vm14, %v1143_v7, %v1139_v24  ;;  %v1069_v59 = vrot.slane %v2931_v25, %v4472_v57  ;;  %v417_v51 = vsel %vm353_vm10, %v4463_v17, 1.0  ;;  %v4473_v56 = vld [vmem:[#allocation34_spill] sm:$0xff]  ;;  %v2960_v13 = vmul.f32 %v4461_v47, %v4475_v36 }
 0x119   : > { %v1828_v48 = vpop.eup %1827  ;;  %v2956_v53 = vmul.f32 %v635_v44, %v4473_v56  ;;  %vm4477_vm0 = vmmov %vm4471_vm14  ;;  %v418_v7 = vsel %vm354_vm11, %v2689_v27, 1.0  ;;  %v2968_v0 = vmul.f32 %v636_v34, %v4478_v33  ;;  %v2972_v49 = vmul.f32 %v4469_v40, %v4480_v58  ;;  %v4482_v44 = vld [vmem:[#allocation51_spill] sm:$0xff]  ;;  %v4488_v34 = vld [vmem:[#allocation52_spill] sm:$0xff] }
 0x11a   : > { %v2953_v29 = vpop.xlane.xlu1 %256  ;;  %4476 = vst [vmem:[#allocation48_spill] sm:$0xff] %v2960_v13  ;;  %v1065_v24 = vsel %vm4477_vm0, %v1064_v39, %v2761_v15  ;;  %v1830_v8 = vpop.eup %1829  ;;  %v605_v56 = vmul.f32 %v4482_v44, %v4482_v44  ;;  %vm4483_vm12 = vcmask 523712   ;;  %v4484_v15 = vld [vmem:[#allocation37_spill] sm:$0xff]  ;;  %v606_v33 = vmul.f32 %v4488_v34, %v4488_v34  ;;  %v4489_v58 = vld [vmem:[#allocation38_spill] sm:$0xff]  ;;  %vm4520_vm14 = vmmov %vm4477_vm0 }
 0x11b   : > { %4474 = vst [vmem:[#allocation46_spill] sm:$0xff] %v2956_v53  ;;  %4479 = vst [vmem:[#allocation53_spill] sm:$0xff] %v2968_v0  ;;  %v1070_v36 = vsel %vm4483_vm12, %v1069_v59, %v1065_v24  ;;  %v2977_v47 = vpop.xlane.xlu0 %224  ;;  %v2980_v39 = vmul.f32 %v620_v2, %v4484_v15  ;;  %v4486_v53 = vld [vmem:[#allocation17_spill] sm:$0xff]  ;;  %1839 = vrsqrt.f32 %v417_v51  ;;  %v2989_v40 = vmul.f32 %v621_v3, %v4489_v58  ;;  %v4491_v24 = vld [vmem:[#allocation18_spill] sm:$0xff] }
 0x11c   : > { %4481 = vst [vmem:[#allocation32_spill] sm:$0xff] %v2972_v49  ;;  %v2984_v13 = vmul.f32 %v4470_v35, %v4486_v53  ;;  %1841 = vrsqrt.f32 %v418_v7  ;;  %v2993_v59 = vsel %vm385_vm4, %v1826_v10, 0.0  ;;  %v2997_v2 = vsel %vm386_vm5, %v1828_v48, 0.0  ;;  %v4492_v51 = vld [vmem:[#allocation39_spill] sm:$0xff]  ;;  %vm4503_vm3 = vmmov %vm4483_vm12 }
 0x11d   : > { %4485 = vst [vmem:[#allocation33_spill] sm:$0xff] %v2980_v39  ;;  %4490 = vst [vmem:[#allocation49_spill] sm:$0xff] %v2989_v40  ;;  %v3001_v53 = vmul.f32 %v4482_v44, %v4491_v24  ;;  %v637_v35 = vmul.f32 %v2654_v60, %v2654_v60  ;;  %v3007_v3 = vsel %vm370_vm6, %v1830_v8, 0.0  ;;  %vm909_vm1 = vcmask 654912   ;;  %v1832_v10 = vpop.eup %1831  ;;  %v4494_v48 = vld [vmem:[#allocation19_spill] sm:$0xff]  ;;  %v4496_v40 = vld [vmem:[#allocation41_spill] sm:$0xff] }
 0x11e   : > { %4487 = vst [vmem:[#allocation14_spill] sm:$0xff] %v2984_v13  ;;  %vm355_vm2 = vcmp.gt.f32.partialorder %v2772_v30, 0.0  ;;  %v3011_v7 = vmul.f32 %v605_v56, %v4492_v51  ;;  %v3015_v15 = vmul.f32 %v4488_v34, %v4494_v48  ;;  %v638_v44 = vmul.f32 %v2658_v22, %v2658_v22  ;;  %v3021_v24 = vpop.xlane.xlu1 %320  ;;  %v1834_v8 = vpop.eup %1833  ;;  %v4498_v13 = vld [vmem:[#allocation20_spill] sm:$0xff]  ;;  %v4500_v51 = vld [vmem:[#allocation21_spill] sm:$0xff]  ;;  %v4502_v48 = vld [vmem:[#allocation35_spill] sm:$0xff] }
 0x11f   : > { %v1148_v58 = vrot.slane %v2993_v59, %v4472_v57  ;;  %v3024_v39 = vmul.f32 %v606_v33, %v4496_v40  ;;  %v3028_v56 = vmul.f32 %v2654_v60, %v4498_v13  ;;  %v3032_v34 = vmul.f32 %v2658_v22, %v4500_v51  ;;  %v1836_v0 = vpop.eup %1835  ;;  %v3044_v13 = vpop.xlane.xlu0 %288  ;;  %v4504_v22 = vld [vmem:[#allocation42_spill] sm:$0xff] }
 0x120   : > { %4493 = vst [vmem:[#allocation50_spill] sm:$0xff] %v3011_v7  ;;  %4495 = vst [vmem:[#allocation31_spill] sm:$0xff] %v3015_v15  ;;  %v1153_v49 = vrot.slane %v2997_v2, %v4502_v48  ;;  %v622_v7 = vmul.f32 %v2700_v1, %v2700_v1  ;;  %v1074_v33 = vrot.slane %v3007_v3, %v4502_v48  ;;  %v419_v60 = vsel %vm355_vm2, %v2772_v30, 1.0 }
 0x121   : > { %4497 = vst [vmem:[#allocation34_spill] sm:$0xff] %v3024_v39  ;;  %4499 = vst [vmem:[#allocation15_spill] sm:$0xff] %v3028_v56  ;;  %v1149_v15 = vsel %vm4503_vm3, %v1148_v58, %v1144_v6  ;;  %v3047_v40 = vmul.f32 %v637_v35, %v4504_v22  ;;  %v543_v51 = vsel %vm351_vm7, %v1832_v10, 0.0  ;;  %vm4506_vm4 = vcmask 589312   ;;  %v1838_v6 = vpop.eup %1837  ;;  %v4509_v35 = vld [vmem:[#allocation22_spill] sm:$0xff] }
 0x122   : > { %4501 = vst [vmem:[#allocation36_spill] sm:$0xff] %v3032_v34  ;;  %v1154_v34 = vsel %vm4506_vm4, %v1153_v49, %v1149_v15  ;;  %vm339_vm5 = vcmp.gt.f32.partialorder %v2774_v55, 0.0  ;;  %v3054_v58 = vmul.f32 %v638_v44, %v2538_v37  ;;  %vm4508_vm6 = vmmov %vm4506_vm4  ;;  %v3059_v39 = vsel %vm387_vm9, %v1834_v8, 0.0  ;;  %v4512_v44 = vld [vmem:[#allocation54_spill] sm:$0xff] }
 0x123   : > { %4505 = vst [vmem:[#allocation16_spill] sm:$0xff] %v3047_v40  ;;  %v1075_v56 = vsel %vm4508_vm6, %v1074_v33, %v1070_v36  ;;  %vm388_vm13 = vcmp.gt.f32.partialorder %v2894_v5, 0.0  ;;  %v3064_v22 = vmul.f32 %v2700_v1, %v4509_v35  ;;  %v623_v49 = vmul.f32 %v2729_v62, %v2729_v62  ;;  %v3078_v1 = vpop.xlane.xlu1 %258  ;;  %vm4535_vm12 = vmmov %vm4506_vm4 }
 0x124   : > { %4507 = vst [vmem:[#allocation51_spill] sm:$0xff] %v3054_v58  ;;  %v544_v10 = vsel %vm352_vm8, %v1836_v0, 0.0  ;;  %1843 = vrsqrt.f32 %v419_v60  ;;  %v3071_v37 = vmul.f32 %v622_v7, %v2540_v14  ;;  %v607_v36 = vmul.f32 %v543_v51, %v543_v51  ;;  %v4513_v7 = vld [vmem:[#allocation23_spill] sm:$0xff] }
 0x125   : > { %4510 = vst [vmem:[#allocation37_spill] sm:$0xff] %v3064_v22  ;;  %v403_v15 = vsel %vm339_vm5, %v2774_v55, 1.0  ;;  %v1158_v8 = vrot.slane %v3059_v39, %v4512_v44  ;;  %v980_v33 = vrot.slane %v543_v51, %v2387_v28  ;;  %v3083_v0 = vsel %vm371_vm15, %v1838_v6, 0.0  ;;  %v3097_v28 = vpop.xlane.xlu0 %226 }
 0x126   : > { %4511 = vst [vmem:[#allocation17_spill] sm:$0xff] %v3071_v37  ;;  %v452_v14 = vsel %vm388_vm13, %v2894_v5, 1.0  ;;  %vm372_vm7 = vcmp.gt.f32.partialorder %v2916_v32, 0.0  ;;  %v3091_v60 = vmul.f32 %v2729_v62, %v4513_v7  ;;  %v608_v35 = vmul.f32 %v544_v10, %v544_v10  ;;  %v1895_v7 = vld [vmem:[%s2147_s30 + $0xa8] sm:$0xff] }
 0x127   : > { %v3094_v37 = vsel %vm909_vm1, %v1158_v8, %v1154_v34  ;;  %vm356_vm9 = vcmp.gt.f32.partialorder %v2846_v12, 0.0  ;;  %v3100_v6 = vmul.f32 %v623_v49, %v2561_v11  ;;  %v985_v22 = vrot.slane %v544_v10, %v4464_v26 }
 0x128   : > { %4514 = vst [vmem:[#allocation52_spill] sm:$0xff] %v3091_v60  ;;  %1845 = vrsqrt.f32 %v403_v15  ;;  %v1079_v58 = vrot.slane %v3083_v0, %v4512_v44  ;;  %v1840_v62 = vpop.eup %1839  ;;  %v3106_v60 = vmul.f32 %v1895_v7, %v543_v51  ;;  %vm340_vm8 = vcmp.gt.f32.partialorder %v2848_v4, 0.0 }
 0x129   : > { %4515 = vst [vmem:[#allocation38_spill] sm:$0xff] %v3100_v6  ;;  %1847 = vrsqrt.f32 %v452_v14  ;;  %v436_v34 = vsel %vm372_vm7, %v2916_v32, 1.0  ;;  %v1842_v11 = vpop.eup %1841  ;;  %v3113_v49 = vmul.f32 %v607_v36, %v2563_v23  ;;  %vm4517_vm15 = vcmask 392512   ;;  %v1896_v14 = vld [vmem:[%s2147_s30 + $0xb0] sm:$0xff]  ;;  %v3129_v23 = vpop.xlane.xlu1 %322 }
 0x12a   : > { %v981_v26 = vsel %vm4517_vm15, %v980_v33, %v2685_v18  ;;  %v3118_v15 = vsel %vm909_vm1, %v1079_v58, %v1075_v56  ;;  %v420_v51 = vsel %vm356_vm9, %v2846_v12, 1.0  ;;  %v3124_v8 = vmul.f32 %v608_v35, %v4431_v46  ;;  %v3146_v35 = vpop.xlane.xlu0 %290 }
 0x12b   : > { %4516 = vst [vmem:[#allocation18_spill] sm:$0xff] %v3113_v49  ;;  %v3127_v7 = vmul.f32 %v1896_v14, %v544_v10  ;;  %1849 = vrsqrt.f32 %v436_v34  ;;  %v3132_v36 = vadd.s32 16, %v2336_v41  ;;  %v986_v18 = vsel %vm4520_vm14, %v985_v22, %v981_v26  ;;  %4521 = vst [vmem:[#allocation41_spill] sm:$0xff] %v3146_v35 }
 0x12c   : > { %4518 = vst [vmem:[#allocation39_spill] sm:$0xff] %v3124_v8  ;;  %v639_v56 = vmul.f32 %v2889_v45, %v2889_v45  ;;  %v545_v58 = vsel %vm353_vm10, %v1840_v62, 0.0  ;;  %v404_v46 = vsel %vm340_vm8, %v2848_v4, 1.0  ;;  %v640_v10 = vmul.f32 %v2914_v20, %v2914_v20 }
 0x12d   : > { %4519 = vst [vmem:[#allocation19_spill] sm:$0xff] %v3127_v7  ;;  %v546_v33 = vsel %vm354_vm11, %v1842_v11, 0.0  ;;  %1851 = vrsqrt.f32 %v420_v51  ;;  %v3149_v22 = vadd.s32 24, %v2336_v41  ;;  %v624_v62 = vmul.f32 %v2927_v21, %v2927_v21  ;;  %v1897_v11 = vld [vmem:[%s2147_s30 + $0x1a8] sm:$0xff]  ;;  %vm4533_vm11 = vmmov %vm4503_vm3 }
 0x12e   : > { %v625_v34 = vmul.f32 %v2931_v25, %v2931_v25  ;;  %v3156_v26 = vadd.s32 32, %v2336_v41  ;;  %v3159_v14 = vadd.s32 40, %v2336_v41  ;;  %v3163_v51 = vmul.f32 %v1897_v11, %v2889_v45 }
 0x12f   : > { %v609_v6 = vmul.f32 %v545_v58, %v545_v58  ;;  %1853 = vrsqrt.f32 %v404_v46  ;;  %v3166_v40 = vadd.s32 48, %v2336_v41  ;;  %v3169_v8 = vmul.f32 %v639_v56, %v2590_v16  ;;  %v1898_v46 = vld [vmem:[%s2147_s30 + $0x1b0] sm:$0xff]  ;;  %v3187_v56 = vpop.xlane.xlu1 %260 }
 0x130   : > { %4522 = vst [vmem:[#allocation20_spill] sm:$0xff] %v3156_v26  ;;  %4523 = vst [vmem:[#allocation21_spill] sm:$0xff] %v3159_v14  ;;  %v990_v49 = vrot.slane %v545_v58, %v4472_v57  ;;  %v610_v7 = vmul.f32 %v546_v33, %v546_v33  ;;  %v3173_v26 = vadd.s32 56, %v2336_v41  ;;  %v3176_v45 = vmul.f32 %v640_v10, %v2612_v9  ;;  %v1900_v10 = vld [vmem:[%s2147_s30 + $0x138] sm:$0xff] }
 0x131   : > { %4524 = vst [vmem:[#allocation35_spill] sm:$0xff] %v3163_v51  ;;  %4525 = vst [vmem:[#allocation42_spill] sm:$0xff] %v3169_v8  ;;  %v1844_v14 = vpop.eup %1843  ;;  %v3180_v11 = vmul.f32 %v1898_v46, %v2914_v20  ;;  %v1899_v51 = vld [vmem:[%s2147_s30 + $0x130] sm:$0xff]  ;;  %v995_v57 = vrot.slane %v546_v33, %v4502_v48  ;;  %vm916_vm10 = vcmask 720512   ;;  %v3190_v8 = vmul.f32 %v624_v62, %v2614_v63  ;;  %v1901_v48 = vld [vmem:[%s2147_s30 + $0xb8] sm:$0xff]  ;;  %v3212_v62 = vpop.xlane.xlu0 %228 }
 0x132   : > { %4526 = vst [vmem:[#allocation22_spill] sm:$0xff] %v3176_v45  ;;  %v3184_v16 = vmul.f32 %v1899_v51, %v2927_v21  ;;  %v3193_v9 = vmul.f32 %v625_v34, %v2638_v54  ;;  %v3197_v20 = vmul.f32 %v1900_v10, %v2931_v25  ;;  %v641_v21 = vmul.f32 %v2993_v59, %v2993_v59  ;;  %v1910_v45 = vld [vmem:[%s2147_s30 + $0xd0] sm:$0xff] }
 0x133   : > { %4527 = vst [vmem:[#allocation54_spill] sm:$0xff] %v3180_v11  ;;  %4529 = vst [vmem:[#allocation74_spill] sm:$0xff] %v3190_v8  ;;  %v3202_v51 = vmul.f32 %v609_v6, %v4463_v17  ;;  %v3205_v46 = vmul.f32 %v1901_v48, %v545_v58  ;;  %v642_v54 = vmul.f32 %v2997_v2, %v2997_v2  ;;  %v547_v17 = vsel %vm355_vm2, %v1844_v14, 0.0  ;;  %v1905_v14 = vld [vmem:[%s2147_s30 + $0x140] sm:$0xff] }
 0x134   : > { %4528 = vst [vmem:[#allocation23_spill] sm:$0xff] %v3184_v16  ;;  %4530 = vst [vmem:[#allocation75_spill] sm:$0xff] %v3193_v9  ;;  %v1902_v16 = vld [vmem:[%s2147_s30 + $0xc0] sm:$0xff]  ;;  %v991_v25 = vsel %vm4533_vm11, %v990_v49, %v986_v18  ;;  %v3216_v34 = vmul.f32 %v610_v7, %v2689_v27  ;;  %vm357_vm0 = vcmp.gt.f32.partialorder %v2953_v29, 0.0  ;;  %v626_v10 = vmul.f32 %v3007_v3, %v3007_v3  ;;  %v1906_v9 = vld [vmem:[%s2147_s30 + $0xc8] sm:$0xff] }
 0x135   : > { %4531 = vst [vmem:[#allocation76_spill] sm:$0xff] %v3197_v20  ;;  %4532 = vst [vmem:[#allocation77_spill] sm:$0xff] %v3202_v51  ;;  %v3208_v63 = vmul.f32 %v1902_v16, %v546_v33  ;;  %v1846_v6 = vpop.eup %1845  ;;  %v996_v58 = vsel %vm4535_vm12, %v995_v57, %v991_v25  ;;  %v1903_v33 = vld [vmem:[%s2147_s30 + $0x1b8] sm:$0xff]  ;;  %vm341_vm3 = vcmp.gt.f32.partialorder %v2977_v47, 0.0  ;;  %v3230_v27 = vmul.f32 %v641_v21, %v2691_v19  ;;  %v1904_v7 = vld [vmem:[%s2147_s30 + $0x1c0] sm:$0xff] }
 0x136   : > { %4534 = vst [vmem:[#allocation78_spill] sm:$0xff] %v3216_v34  ;;  %v3224_v16 = vmul.f32 %v1903_v33, %v2993_v59  ;;  %v1848_v49 = vpop.eup %1847  ;;  %v3234_v18 = vmul.f32 %v1904_v7, %v2997_v2  ;;  %v3238_v57 = vmul.f32 %v1905_v14, %v3007_v3  ;;  %vm389_vm2 = vcmp.gt.f32.partialorder %v3021_v24, 0.0  ;;  %v3251_v2 = vpop.xlane.xlu1 %324 }
 0x137   : > { %4537 = vst [vmem:[#allocation80_spill] sm:$0xff] %v3230_v27  ;;  %v3242_v59 = vmul.f32 %v642_v54, %v2734_v31  ;;  %v611_v48 = vmul.f32 %v547_v17, %v547_v17  ;;  %v3246_v25 = vsel %vm388_vm13, %v1848_v49, 0.0  ;;  %v421_v19 = vsel %vm357_vm0, %v2953_v29, 1.0  ;;  %v3272_v7 = vpop.xlane.xlu0 %292 }
 0x138   : > { %4536 = vst [vmem:[#allocation79_spill] sm:$0xff] %v3224_v16  ;;  %4538 = vst [vmem:[#allocation81_spill] sm:$0xff] %v3234_v18  ;;  %v1850_v21 = vpop.eup %1849  ;;  %v531_v3 = vsel %vm339_vm5, %v1846_v6, 0.0  ;;  %v1163_v31 = vrot.slane %v3246_v25, %v2661_v61  ;;  %v405_v54 = vsel %vm341_vm3, %v2977_v47, 1.0  ;;  %vm373_vm4 = vcmp.gt.f32.partialorder %v3044_v13, 0.0 }
 0x139   : > { %4539 = vst [vmem:[#allocation82_spill] sm:$0xff] %v3238_v57  ;;  %4540 = vst [vmem:[#allocation83_spill] sm:$0xff] %v3242_v59  ;;  %v3262_v33 = vmul.f32 %v626_v10, %v2736_v52  ;;  %v3266_v49 = vsel %vm372_vm7, %v1850_v21, 0.0  ;;  %v453_v6 = vsel %vm389_vm2, %v3021_v24, 1.0  ;;  %vm358_vm5 = vcmp.gt.f32.partialorder %v3078_v1, 0.0 }
 0x13a   : > { %4542 = vst [vmem:[#allocation85_spill] sm:$0xff] %v3272_v7  ;;  %v1852_v14 = vpop.eup %1851  ;;  %v3275_v8 = vmul.f32 %v1906_v9, %v547_v17  ;;  %v1000_v57 = vrot.slane %v547_v17, %v4512_v44  ;;  %v3280_v52 = vsel %vm916_vm10, %v1163_v31, %v3094_v37  ;;  %1855 = vrsqrt.f32 %v421_v19 }
 0x13b   : > { %4541 = vst [vmem:[#allocation84_spill] sm:$0xff] %v3262_v33  ;;  %v595_v10 = vmul.f32 %v531_v3, %v531_v3  ;;  %v1084_v21 = vrot.slane %v3266_v49, %v2661_v61  ;;  %1857 = vrsqrt.f32 %v405_v54  ;;  %v437_v33 = vsel %vm373_vm4, %v3044_v13, 1.0 }
 0x13c   : > { %v1854_v20 = vpop.eup %1853  ;;  %v3288_v9 = vmul.f32 %v611_v48, %v2772_v30  ;;  %1859 = vrsqrt.f32 %v453_v6  ;;  %v422_v37 = vsel %vm358_vm5, %v3078_v1, 1.0  ;;  %vm342_vm6 = vcmp.gt.f32.partialorder %v3097_v28, 0.0  ;;  %v3303_v30 = vpop.xlane.xlu1 %262  ;;  %v1907_v6 = vld [vmem:[%s2147_s30 + $0x48] sm:$0xff] }
 0x13d   : > { %v908_v17 = vrot.slane %v531_v3, %v4512_v44  ;;  %v643_v19 = vmul.f32 %v3059_v39, %v3059_v39  ;;  %v548_v31 = vsel %vm356_vm9, %v1852_v14, 0.0  ;;  %v3301_v54 = vsel %vm916_vm10, %v1084_v21, %v3118_v15  ;;  %v1908_v14 = vld [vmem:[%s2147_s30 + $0x1c8] sm:$0xff] }
 0x13e   : > { %4543 = vst [vmem:[#allocation86_spill] sm:$0xff] %v3288_v9  ;;  %v1001_v48 = vsel %vm909_vm1, %v1000_v57, %v996_v58  ;;  %v3307_v59 = vmul.f32 %v1907_v6, %v531_v3  ;;  %1861 = vrsqrt.f32 %v437_v33  ;;  %vm390_vm13 = vcmp.gt.f32.partialorder %v3129_v23, 0.0  ;;  %v3320_v58 = vpop.xlane.xlu0 %230  ;;  %v4547_v33 = vld [vmem:[#allocation40_spill] sm:$0xff]  ;;  %v1909_v6 = vld [vmem:[%s2147_s30 + $0x148] sm:$0xff] }
 0x13f   : > { %v3311_v44 = vmul.f32 %v595_v10, %v2774_v55  ;;  %v3315_v27 = vmul.f32 %v1908_v14, %v3059_v39  ;;  %1863 = vrsqrt.f32 %v422_v37  ;;  %v406_v15 = vsel %vm342_vm6, %v3097_v28, 1.0 }
 0x140   : > { %4544 = vst [vmem:[#allocation87_spill] sm:$0xff] %v3307_v59  ;;  %v627_v57 = vmul.f32 %v3083_v0, %v3083_v0  ;;  %v612_v3 = vmul.f32 %v548_v31, %v548_v31  ;;  %v532_v55 = vsel %vm340_vm8, %v1854_v20, 0.0  ;;  %vm4327_vm7 = vcmp.gt.f32.partialorder %v3146_v35, 0.0 }
 0x141   : > { %4545 = vst [vmem:[#allocation88_spill] sm:$0xff] %v3311_v44  ;;  %4546 = vst [vmem:[#allocation89_spill] sm:$0xff] %v3315_v27  ;;  %v910_v39 = vsel %vm909_vm1, %v908_v17, %v4547_v33  ;;  %v3330_v10 = vmul.f32 %v643_v19, %v2812_v43  ;;  %v1005_v21 = vrot.slane %v548_v31, %v2661_v61  ;;  %v454_v37 = vsel %vm390_vm13, %v3129_v23, 1.0  ;;  %v3349_v33 = vpop.xlane.xlu1 %326 }
 0x142   : > { %v3338_v14 = vmul.f32 %v1909_v6, %v3083_v0  ;;  %v3341_v20 = vmul.f32 %v1910_v45, %v548_v31  ;;  %1865 = vrsqrt.f32 %v406_v15  ;;  %vm359_vm9 = vcmp.gt.f32.partialorder %v3187_v56, 0.0 }
 0x143   : > { %4548 = vst [vmem:[#allocation40_spill] sm:$0xff] %v3330_v10  ;;  %v596_v17 = vmul.f32 %v532_v55, %v532_v55  ;;  %v915_v43 = vrot.slane %v532_v55, %v2661_v61  ;;  %v438_v19 = vsel %vm4327_vm7, %v3146_v35, 1.0  ;;  %vm4328_vm1 = vcmp.gt.f32.partialorder %v3212_v62, 0.0 }
 0x144   : > { %4549 = vst [vmem:[#allocation90_spill] sm:$0xff] %v3338_v14  ;;  %v3352_v0 = vmul.f32 %v627_v57, %v2814_v50  ;;  %v3355_v45 = vmul.f32 %v612_v3, %v2846_v12  ;;  %1867 = vrsqrt.f32 %v454_v37  ;;  %vm391_vm8 = vcmp.gt.f32.partialorder %v3251_v2, 0.0  ;;  %v3366_v50 = vpop.xlane.xlu0 %294  ;;  %v1911_v57 = vld [vmem:[%s2147_s30 + $0x50] sm:$0xff] }
 0x145   : > { %v3359_v61 = vsel %vm916_vm10, %v1005_v21, %v1001_v48  ;;  %v423_v31 = vsel %vm359_vm9, %v3187_v56, 1.0  ;;  %vm375_vm15 = vcmp.gt.f32.partialorder %v3272_v7, 0.0  ;;  %vm360_vm14 = vcmp.gt.f32.partialorder %v3303_v30, 0.0  ;;  %4552 = vst [vmem:[#allocation93_spill] sm:$0xff] %v3366_v50  ;;  %v1912_v14 = vld [vmem:[%s2147_s30 + $0x1d0] sm:$0xff] }
 0x146   : > { %4550 = vst [vmem:[#allocation91_spill] sm:$0xff] %v3352_v0  ;;  %4551 = vst [vmem:[#allocation92_spill] sm:$0xff] %v3355_v45  ;;  %vm923_vm11 = vcmask 786112   ;;  %1869 = vrsqrt.f32 %v438_v19  ;;  %v407_v12 = vsel %vm4328_vm1, %v3212_v62, 1.0  ;;  %vm344_vm12 = vcmp.gt.f32.partialorder %v3320_v58, 0.0 }
 0x147   : > { %vm392_vm7 = vcmp.gt.f32.partialorder %v3349_v33, 0.0  ;;  %v1856_v48 = vpop.eup %1855  ;;  %v3374_v15 = vmul.f32 %v596_v17, %v2848_v4  ;;  %v3377_v3 = vmul.f32 %v1911_v57, %v532_v55  ;;  %v917_v21 = vsel %vm916_vm10, %v915_v43, %v910_v39 }
 0x148   : > { %v455_v37 = vsel %vm391_vm8, %v3251_v2, 1.0  ;;  %v1858_v6 = vpop.eup %1857  ;;  %1871 = vrsqrt.f32 %v423_v31  ;;  %v439_v19 = vsel %vm375_vm15, %v3272_v7, 1.0  ;;  %v424_v4 = vsel %vm360_vm14, %v3303_v30, 1.0 }
 0x149   : > { %4553 = vst [vmem:[#allocation94_spill] sm:$0xff] %v3374_v15  ;;  %4554 = vst [vmem:[#allocation95_spill] sm:$0xff] %v3377_v3  ;;  %vm376_vm1 = vcmp.gt.f32.partialorder %v3366_v50, 0.0  ;;  %v1860_v55 = vpop.eup %1859  ;;  %1873 = vrsqrt.f32 %v407_v12  ;;  %v408_v39 = vsel %vm344_vm12, %v3320_v58, 1.0  ;;  %v456_v17 = vsel %vm392_vm7, %v3349_v33, 1.0 }
 0x14a   : > { %v3397_v43 = vadd.s32 64, %v2336_v41  ;;  %v644_v31 = vmul.f32 %v3246_v25, %v3246_v25  ;;  %v549_v57 = vsel %vm357_vm0, %v1856_v48, 0.0  ;;  %1875 = vrsqrt.f32 %v455_v37 }
 0x14b   : > { %v3404_v12 = vadd.s32 72, %v2336_v41  ;;  %v1862_v0 = vpop.eup %1861  ;;  %v3408_v10 = vmul.f32 %v1912_v14, %v3246_v25  ;;  %1877 = vrsqrt.f32 %v439_v19  ;;  %v440_v27 = vsel %vm376_vm1, %v3366_v50, 1.0 }
 0x14c   : > { %v3414_v18 = vadd.s32 80, %v2336_v41  ;;  %v1864_v16 = vpop.eup %1863  ;;  %v628_v48 = vmul.f32 %v3266_v49, %v3266_v49  ;;  %v533_v37 = vsel %vm341_vm3, %v1858_v6, 0.0  ;;  %v581_v11 = vsel %vm389_vm2, %v1860_v55, 0.0 }
 0x14d   : > { %4555 = vst [vmem:[#allocation96_spill] sm:$0xff] %v3408_v10  ;;  %1879 = vrsqrt.f32 %v424_v4  ;;  %v613_v25 = vmul.f32 %v549_v57, %v549_v57  ;;  %v1010_v14 = vrot.slane %v549_v57, %v2664_v38  ;;  %v3424_v19 = vadd.s32 88, %v2336_v41 }
 0x14e   : > { %1881 = vrsqrt.f32 %v408_v39  ;;  %v3427_v10 = vmul.f32 %v644_v31, %v2894_v5  ;;  %v565_v15 = vsel %vm373_vm4, %v1862_v0, 0.0  ;;  %v3432_v6 = vadd.s32 96, %v2336_v41  ;;  %v3437_v5 = vpop.xlane.xlu1 %264  ;;  %v1913_v0 = vld [vmem:[%s2147_s30 + $0x150] sm:$0xff] }
 0x14f   : > { %1883 = vrsqrt.f32 %v456_v17  ;;  %v1866_v4 = vpop.eup %1865  ;;  %v597_v55 = vmul.f32 %v533_v37, %v533_v37  ;;  %v922_v44 = vrot.slane %v533_v37, %v2664_v38  ;;  %v645_v39 = vmul.f32 %v581_v11, %v581_v11 }
 0x150   : > { %4556 = vst [vmem:[#allocation97_spill] sm:$0xff] %v3427_v10  ;;  %vm930_vm10 = vcmask 851712   ;;  %v550_v3 = vsel %vm358_vm5, %v1864_v16, 0.0  ;;  %v3440_v31 = vmul.f32 %v628_v48, %v2916_v32  ;;  %v3444_v17 = vmul.f32 %v1913_v0, %v3266_v49  ;;  %v1914_v16 = vld [vmem:[%s2147_s30 + $0xd8] sm:$0xff] }
 0x151   : > { %v1168_v10 = vrot.slane %v581_v11, %v2664_v38  ;;  %v3448_v59 = vadd.s32 104, %v2336_v41  ;;  %v1868_v45 = vpop.eup %1867  ;;  %v3451_v9 = vmul.f32 %v613_v25, %v2953_v29  ;;  %v3454_v34 = vmul.f32 %v1914_v16, %v549_v57  ;;  %v1915_v48 = vld [vmem:[%s2147_s30 + $0x58] sm:$0xff] }
 0x152   : > { %4557 = vst [vmem:[#allocation98_spill] sm:$0xff] %v3440_v31  ;;  %4558 = vst [vmem:[#allocation99_spill] sm:$0xff] %v3444_v17  ;;  %v1011_v32 = vsel %vm923_vm11, %v1010_v14, %v3359_v61  ;;  %v629_v49 = vmul.f32 %v565_v15, %v565_v15  ;;  %v3459_v0 = vmul.f32 %v1915_v48, %v533_v37  ;;  %v534_v51 = vsel %vm342_vm6, %v1866_v4, 0.0  ;;  %v1916_v61 = vld [vmem:[%s2147_s30 + $0x1d8] sm:$0xff]  ;;  %v1918_v4 = vld [vmem:[%s2147_s30 + $0xe0] sm:$0xff] }
 0x153   : > { %v1089_v31 = vrot.slane %v565_v15, %v2664_v38  ;;  %v614_v17 = vmul.f32 %v550_v3, %v550_v3  ;;  %v1870_v29 = vpop.eup %1869  ;;  %v3465_v25 = vmul.f32 %v597_v55, %v2977_v47  ;;  %v924_v57 = vsel %vm923_vm11, %v922_v44, %v917_v21  ;;  %v1917_v38 = vld [vmem:[%s2147_s30 + $0x158] sm:$0xff] }
 0x154   : > { %4559 = vst [vmem:[#allocation100_spill] sm:$0xff] %v3459_v0  ;;  %v3469_v16 = vmul.f32 %v645_v39, %v3021_v24  ;;  %v3472_v14 = vmul.f32 %v1916_v61, %v581_v11  ;;  %v1169_v37 = vsel %vm923_vm11, %v1168_v10, %v3280_v52  ;;  %v3477_v48 = vmul.f32 %v1917_v38, %v565_v15  ;;  %v3488_v52 = vpop.xlane.xlu0 %232  ;;  %v3490_v10 = vpop.xlane.xlu1 %328 }
 0x155   : > { %4560 = vst [vmem:[#allocation101_spill] sm:$0xff] %v3465_v25  ;;  %v3480_v0 = vmul.f32 %v1918_v4, %v550_v3  ;;  %v582_v47 = vsel %vm390_vm13, %v1868_v45, 0.0  ;;  %v1872_v44 = vpop.eup %1871  ;;  %v3485_v24 = vmul.f32 %v629_v49, %v3044_v13  ;;  %v1015_v11 = vrot.slane %v550_v3, %v2672_v42  ;;  %4565 = vst [vmem:[#allocation106_spill] sm:$0xff] %v3490_v10  ;;  %v1919_v45 = vld [vmem:[%s2147_s30 + $0x60] sm:$0xff] }
 0x156   : > { %4561 = vst [vmem:[#allocation102_spill] sm:$0xff] %v3469_v16  ;;  %4562 = vst [vmem:[#allocation103_spill] sm:$0xff] %v3472_v14  ;;  %v598_v21 = vmul.f32 %v534_v51, %v534_v51  ;;  %vm4339_vm0 = vcmask 917312   ;;  %1885 = vrsqrt.f32 %v440_v27  ;;  %v1874_v15 = vpop.eup %1873  ;;  %v1090_v55 = vsel %vm923_vm11, %v1089_v31, %v3301_v54 }
 0x157   : > { %4563 = vst [vmem:[#allocation104_spill] sm:$0xff] %v3477_v48  ;;  %4564 = vst [vmem:[#allocation105_spill] sm:$0xff] %v3485_v24  ;;  %v3495_v39 = vmul.f32 %v614_v17, %v3078_v1  ;;  %v3498_v61 = vmul.f32 %v1919_v45, %v534_v51  ;;  %vm4567_vm3 = vcmp.gt.f32.partialorder %v3146_v35, 0.0  ;;  %v1876_v3 = vpop.eup %1875  ;;  %v929_v27 = vrot.slane %v534_v51, %v2672_v42  ;;  %v1920_v48 = vld [vmem:[%s2147_s30 + $0x1e0] sm:$0xff] }
 0x158   : > { %v566_v13 = vsel %vm4567_vm3, %v1870_v29, 0.0  ;;  %v646_v49 = vmul.f32 %v582_v47, %v582_v47  ;;  %v1173_v38 = vrot.slane %v582_v47, %v2672_v42  ;;  %vm361_vm2 = vcmp.gt.f32.partialorder %v3437_v5, 0.0  ;;  %v1878_v4 = vpop.eup %1877 }
 0x159   : > { %4566 = vst [vmem:[#allocation107_spill] sm:$0xff] %v3498_v61  ;;  %v551_v1 = vsel %vm359_vm9, %v1872_v44, 0.0  ;;  %v425_v54 = vsel %vm361_vm2, %v3437_v5, 1.0  ;;  %vm345_vm4 = vcmp.gt.f32.partialorder %v3488_v52, 0.0  ;;  %vm393_vm5 = vcmp.gt.f32.partialorder %v3490_v10, 0.0 }
 0x15a   : > { %v1880_v31 = vpop.eup %1879  ;;  %v1094_v51 = vrot.slane %v566_v13, %v2672_v42  ;;  %1887 = vrsqrt.f32 %v425_v54  ;;  %v409_v17 = vsel %vm345_vm4, %v3488_v52, 1.0  ;;  %v457_v29 = vsel %vm393_vm5, %v3490_v10, 1.0 }
 0x15b   : > { %v1882_v44 = vpop.eup %1881  ;;  %v1016_v45 = vsel %vm930_vm10, %v1015_v11, %v1011_v32  ;;  %v3521_v24 = vmul.f32 %v598_v21, %v3097_v28  ;;  %v3524_v35 = vmul.f32 %v1920_v48, %v582_v47  ;;  %vm4338_vm6 = vcmask 982912   ;;  %v4573_v28 = vld [vmem:[#allocation56_spill] sm:$0xff] }
 0x15c   : > { %1889 = vrsqrt.f32 %v409_v17  ;;  %v1884_v42 = vpop.eup %1883  ;;  %v931_v54 = vsel %vm930_vm10, %v929_v27, %v924_v57  ;;  %v615_v16 = vmul.f32 %v551_v1, %v551_v1  ;;  %vm4570_vm13 = vcmp.gt.f32.partialorder %v3212_v62, 0.0  ;;  %v1921_v17 = vld [vmem:[%s2147_s30 + $0x160] sm:$0xff] }
 0x15d   : > { %4568 = vst [vmem:[#allocation108_spill] sm:$0xff] %v3521_v24  ;;  %4569 = vst [vmem:[#allocation109_spill] sm:$0xff] %v3524_v35  ;;  %v535_v14 = vsel %vm4570_vm13, %v1874_v15, 0.0  ;;  %1891 = vrsqrt.f32 %v457_v29  ;;  %v3530_v32 = vmul.f32 %v646_v49, %v3129_v23  ;;  %v3532_v11 = vmul.f32 %v566_v13, %v566_v13  ;;  %v1922_v15 = vld [vmem:[%s2147_s30 + $0xe8] sm:$0xff]  ;;  %v4608_v35 = vld [vmem:[#allocation34_spill] sm:$0xff] }
 0x15e   : > { %v1020_v21 = vrot.slane %v551_v1, %v4573_v28  ;;  %v583_v48 = vsel %vm391_vm8, %v1876_v3, 0.0  ;;  %v1174_v47 = vsel %vm930_vm10, %v1173_v38, %v1169_v37  ;;  %v3539_v57 = vmul.f32 %v1921_v17, %v566_v13  ;;  %v3552_v3 = vpop.xlane.xlu0 %296  ;;  %v1923_v17 = vld [vmem:[%s2147_s30 + $0x68] sm:$0xff] }
 0x15f   : > { %4571 = vst [vmem:[#allocation110_spill] sm:$0xff] %v3530_v32  ;;  %4572 = vst [vmem:[#allocation111_spill] sm:$0xff] %v3532_v11  ;;  %v3542_v27 = vsel %vm930_vm10, %v1094_v51, %v1090_v55  ;;  %v3545_v23 = vmul.f32 %v1922_v15, %v551_v1  ;;  %v599_v49 = vmul.f32 %v535_v14, %v535_v14  ;;  %v552_v11 = vsel %vm360_vm14, %v1880_v31, 0.0  ;;  %v1924_v31 = vld [vmem:[%s2147_s30 + $0x1e8] sm:$0xff] }
 0x160   : > { %4574 = vst [vmem:[#allocation112_spill] sm:$0xff] %v3539_v57  ;;  %4575 = vst [vmem:[#allocation113_spill] sm:$0xff] %v3542_v27  ;;  %v936_v29 = vrot.slane %v535_v14, %v4573_v28  ;;  %v536_v37 = vsel %vm344_vm12, %v1882_v44, 0.0  ;;  %v3555_v13 = vmul.f32 %v615_v16, %v3187_v56  ;;  %v647_v55 = vmul.f32 %v583_v48, %v583_v48  ;;  %v4580_v44 = vld [vmem:[#allocation60_spill] sm:$0xff] }
 0x161   : > { %4576 = vst [vmem:[#allocation114_spill] sm:$0xff] %v3552_v3  ;;  %v1178_v38 = vrot.slane %v583_v48, %v4573_v28  ;;  %v584_v1 = vsel %vm392_vm7, %v1884_v42, 0.0  ;;  %vm4341_vm9 = vcmask 1048512   ;;  %v1021_v51 = vsel %vm4339_vm0, %v1020_v21, %v1016_v45 }
 0x162   : > { %v3562_v15 = vmul.f32 %v1923_v17, %v535_v14  ;;  %v3565_v57 = vmul.f32 %v1924_v31, %v583_v48  ;;  %v3569_v56 = vsel %vm375_vm15, %v1878_v4, 0.0  ;;  %v616_v16 = vmul.f32 %v552_v11, %v552_v11 }
 0x163   : > { %4579 = vst [vmem:[#allocation117_spill] sm:$0xff] %v3569_v56  ;;  %v1025_v27 = vrot.slane %v552_v11, %v4580_v44  ;;  %v600_v32 = vmul.f32 %v536_v37, %v536_v37  ;;  %vm4340_vm7 = vcmp.gt.f32.partialorder %v3552_v3, 0.0  ;;  %v1886_v42 = vpop.eup %1885  ;;  %v3574_v45 = vmul.f32 %v599_v49, %v3212_v62  ;;  %v1925_v49 = vld [vmem:[%s2147_s30 + $0xf0] sm:$0xff] }
 0x164   : > { %4577 = vst [vmem:[#allocation115_spill] sm:$0xff] %v3562_v15  ;;  %4578 = vst [vmem:[#allocation116_spill] sm:$0xff] %v3565_v57  ;;  %v938_v14 = vsel %vm4339_vm0, %v936_v29, %v931_v54  ;;  %v943_v21 = vrot.slane %v536_v37, %v4580_v44  ;;  %v648_v48 = vmul.f32 %v584_v1, %v584_v1  ;;  %v1926_v29 = vld [vmem:[%s2147_s30 + $0x70] sm:$0xff]  ;;  %v3605_v62 = vsel %vm376_vm1, %v1886_v42, 0.0 }
 0x165   : > { %4581 = vst [vmem:[#allocation118_spill] sm:$0xff] %v3574_v45  ;;  %v3579_v17 = vmul.f32 %v647_v55, %v3251_v2  ;;  %v1179_v4 = vsel %vm4339_vm0, %v1178_v38, %v1174_v47  ;;  %v3584_v31 = vmul.f32 %v3569_v56, %v3569_v56  ;;  %v1183_v7 = vrot.slane %v584_v1, %v4580_v44  ;;  %v4596_v44 = vld [vmem:[#allocation9_spill] sm:$0xff] }
 0x166   : > { %v744_v54 = vmul.f32 %v1925_v49, %v552_v11  ;;  %v3591_v57 = vmul.f32 %v1926_v29, %v536_v37  ;;  %v441_v2 = vsel %vm4340_vm7, %v3552_v3, 1.0  ;;  %v3597_v47 = vmul.f32 %v616_v16, %v3303_v30  ;;  %4586 = vst [vmem:[#allocation123_spill] sm:$0xff] %v3605_v62  ;;  %v1927_v29 = vld [vmem:[%s2147_s30 + $0x1f0] sm:$0xff]  ;;  %v4603_v56 = vld [vmem:[#allocation21_spill] sm:$0xff] }
 0x167   : > { %4582 = vst [vmem:[#allocation119_spill] sm:$0xff] %v3579_v17  ;;  %4583 = vst [vmem:[#allocation120_spill] sm:$0xff] %v3584_v31  ;;  %v1026_v55 = vsel %vm4338_vm6, %v1025_v27, %v1021_v51  ;;  %v3601_v38 = vmul.f32 %v600_v32, %v3320_v58  ;;  %v1888_v11 = vpop.eup %1887  ;;  %v3608_v37 = vsel %vm4338_vm6, %v943_v21, %v938_v14  ;;  %v3617_v27 = vadd.s32 112, %v2336_v41  ;;  %v4592_v14 = vld [vmem:[#allocation43_spill] sm:$0xff]  ;;  %v4607_v17 = vld [vmem:[#allocation50_spill] sm:$0xff] }
 0x168   : > { %4584 = vst [vmem:[#allocation121_spill] sm:$0xff] %v3591_v57  ;;  %v3611_v49 = vmul.f32 %v648_v48, %v3349_v33  ;;  %v3614_v30 = vmul.f32 %v1927_v29, %v584_v1  ;;  %v3620_v32 = vsel %vm4338_vm6, %v1183_v7, %v1179_v4  ;;  %v3623_v51 = vadd.s32 120, %v2336_v41  ;;  %v1928_v4 = vld [vmem:[%s2147_s30 + $0xf8] sm:$0xff] }
 0x169   : > { %4585 = vst [vmem:[#allocation122_spill] sm:$0xff] %v3601_v38  ;;  %v1890_v58 = vpop.eup %1889  ;;  %4589 = vst [vmem:[#allocation126_spill] sm:$0xff] %v3620_v32  ;;  %v553_v16 = vsel %vm361_vm2, %v1888_v11, 0.0  ;;  %1893 = vrsqrt.f32 %v441_v2  ;;  %v3629_v1 = vmul.f32 %v3605_v62, %v3605_v62  ;;  %v1929_v11 = vld [vmem:[%s2147_s30 + $0x78] sm:$0xff]  ;;  %v4609_v32 = vld [vmem:[#allocation18_spill] sm:$0xff] }
 0x16a   : > { %4587 = vst [vmem:[#allocation124_spill] sm:$0xff] %v3611_v49  ;;  %4588 = vst [vmem:[#allocation125_spill] sm:$0xff] %v3614_v30  ;;  %v1892_v33 = vpop.eup %1891  ;;  %v617_v42 = vmul.f32 %v553_v16, %v553_v16  ;;  %v1030_v21 = vrot.slane %v553_v16, %v4592_v14  ;;  %v3634_v48 = vsel %vm345_vm4, %v1890_v58, 0.0  ;;  %v745_v29 = vmul.f32 %v1928_v4, %v553_v16  ;;  %v4595_v16 = vld [vmem:[#allocation73_spill] sm:$0xff]  ;;  %v4602_v58 = vld [vmem:[#allocation20_spill] sm:$0xff] }
 0x16b   : > { %4590 = vst [vmem:[#allocation127_spill] sm:$0xff] %v3623_v51  ;;  %4591 = vst [vmem:[#allocation128_spill] sm:$0xff] %v3629_v1  ;;  %v3641_v2 = vmul.f32 %v3634_v48, %v3634_v48  ;;  %v3645_v50 = vmul.f32 %v1929_v11, %v3634_v48  ;;  %v3655_v7 = vsel %vm393_vm5, %v1892_v33, 0.0  ;;  %v4597_v11 = vld [vmem:[#allocation45_spill] sm:$0xff]  ;;  %v4610_v38 = vld [vmem:[#allocation39_spill] sm:$0xff] }
 0x16c   : > { %v3648_v1 = vmul.f32 %v617_v42, %v3437_v5  ;;  %v1031_v31 = vsel %vm4341_vm9, %v1030_v21, %v1026_v55  ;;  %4594 = vst [vmem:[#allocation130_spill] sm:$0xff] %v3655_v7  ;;  %v4598_v55 = vld [vmem:[#allocation24_spill] sm:$0xff]  ;;  %v4599_v42 = vld [vmem:[#allocation11_spill] sm:$0xff] }
 0x16d   : > { %4593 = vst [vmem:[#allocation129_spill] sm:$0xff] %v3645_v50  ;;  %v3658_v4 = vmul.f32 %v1031_v31, %v4595_v16  ;;  %v3661_v62 = vmul.f32 %v1031_v31, %v4596_v44  ;;  %v3664_v28 = vmul.f32 %v1031_v31, %v4597_v11  ;;  %v3667_v5 = vmul.f32 %v1031_v31, %v3001_v53  ;;  %v4600_v44 = vld [vmem:[#allocation31_spill] sm:$0xff] }
 0x16e   : > { %vm1305_vm1 = vcmp.eq.s32.totalorder %v2336_v41, %v4598_v55  ;;  %vm1306_vm8 = vcmp.eq.s32.totalorder %v4599_v42, %v4598_v55  ;;  %vm1307_vm15 = vcmp.eq.s32.totalorder %v3132_v36, %v4598_v55  ;;  %vm1308_vm14 = vcmp.eq.s32.totalorder %v3149_v22, %v4598_v55  ;;  %v4601_v53 = vld [vmem:[#allocation19_spill] sm:$0xff] }
 0x16f   : > { %v3678_v33 = vmul.f32 %v1031_v31, %v4600_v44  ;;  %v3681_v21 = vmul.f32 %v1031_v31, %v3106_v60  ;;  %v3684_v16 = vmul.f32 %v1031_v31, %v4601_v53  ;;  %v3687_v11 = vmul.f32 %v1031_v31, %v3205_v46 }
 0x170   : > { %vm1309_vm11 = vcmp.eq.s32.totalorder %v4602_v58, %v4598_v55  ;;  %vm1310_vm12 = vcmp.eq.s32.totalorder %v4603_v56, %v4598_v55  ;;  %vm1311_vm10 = vcmp.eq.s32.totalorder %v3166_v40, %v4598_v55  ;;  %vm1312_vm3 = vcmp.eq.s32.totalorder %v3173_v26, %v4598_v55 }
 0x171   : > { %v3698_v60 = vmul.f32 %v1031_v31, %v3208_v63  ;;  %v3701_v44 = vmul.f32 %v1031_v31, %v3275_v8  ;;  %v3704_v46 = vmul.f32 %v1031_v31, %v3341_v20  ;;  %v3707_v53 = vmul.f32 %v1031_v31, %v3454_v34 }
 0x172   : > { %vm1313_vm2 = vcmp.eq.s32.totalorder %v3397_v43, %v4598_v55  ;;  %vm1314_vm4 = vcmp.eq.s32.totalorder %v3404_v12, %v4598_v55  ;;  %vm1315_vm5 = vcmp.eq.s32.totalorder %v3414_v18, %v4598_v55  ;;  %vm1316_vm13 = vcmp.eq.s32.totalorder %v3424_v19, %v4598_v55 }
 0x173   : > { %v3718_v8 = vmul.f32 %v1031_v31, %v3480_v0  ;;  %v3721_v63 = vmul.f32 %v1031_v31, %v3545_v23  ;;  %v3723_v34 = vmul.f32 %v1031_v31, %v744_v54  ;;  %v3725_v20 = vmul.f32 %v1031_v31, %v745_v29  ;;  %v4604_v0 = vld [vmem:[#allocation44_spill] sm:$0xff]  ;;  %v4605_v54 = vld [vmem:[#allocation27_spill] sm:$0xff]  ;;  %v4606_v31 = vld [vmem:[#allocation30_spill] sm:$0xff] }
 0x174   : > { %vm1317_vm6 = vcmp.eq.s32.totalorder %v3432_v6, %v4598_v55  ;;  %vm4353_vm0 = vcmp.eq.s32.totalorder %v3448_v59, %v4598_v55  ;;  %vm4346_vm7 = vcmp.eq.s32.totalorder %v3617_v27, %v4598_v55  ;;  %vm4351_vm9 = vcmp.eq.s32.totalorder %v3623_v51, %v4598_v55 }
 0x175   : > { %v1337_v23 = vsub.f32 %v4604_v0, %v3658_v4  ;;  %v1338_v49 = vsub.f32 %v4605_v54, %v3661_v62  ;;  %v1339_v29 = vsub.f32 %v4606_v31, %v3664_v28  ;;  %v1340_v30 = vsub.f32 %v4607_v17, %v3667_v5  ;;  %v4611_v0 = vld [vmem:[#allocation77_spill] sm:$0xff]  ;;  %v4612_v54 = vld [vmem:[#allocation78_spill] sm:$0xff]  ;;  %v4614_v17 = vld [vmem:[#allocation92_spill] sm:$0xff] }
 0x176   : > { %v1341_v3 = vsub.f32 %v4608_v35, %v3678_v33  ;;  %v1342_v10 = vsub.f32 %v4609_v32, %v3681_v21  ;;  %v1343_v45 = vsub.f32 %v4610_v38, %v3684_v16  ;;  %v1344_v24 = vsub.f32 %v4611_v0, %v3687_v11  ;;  %v4613_v31 = vld [vmem:[#allocation86_spill] sm:$0xff]  ;;  %v3771_v61 = vpop.eup %1893 }
 0x177   : > { %v1345_v25 = vsub.f32 %v4612_v54, %v3698_v60  ;;  %v1346_v50 = vsub.f32 %v4613_v31, %v3701_v44  ;;  %v1347_v57 = vsub.f32 %v4614_v17, %v3704_v46  ;;  %v1348_v35 = vsub.f32 %v3451_v9, %v3707_v53  ;;  %4615 = vst [vmem:[#allocation73_spill] sm:$0xff] %v3771_v61 }
 0x178   : > { %v1349_v32 = vsub.f32 %v3495_v39, %v3718_v8  ;;  %v1350_v38 = vsub.f32 %v3555_v13, %v3721_v63  ;;  %v1351_v0 = vsub.f32 %v3597_v47, %v3723_v34  ;;  %v1352_v54 = vsub.f32 %v3648_v1, %v3725_v20 }
 0x179   : > { %v1401_v31 = vsub.f32 0.0, %v3658_v4  ;;  %v1402_v15 = vsub.f32 0.0, %v3661_v62  ;;  %v1403_v17 = vsub.f32 0.0, %v3664_v28  ;;  %v1404_v9 = vsub.f32 0.0, %v3667_v5 }
 0x17a   : > { %v1405_v39 = vsub.f32 0.0, %v3678_v33  ;;  %v1406_v13 = vsub.f32 0.0, %v3681_v21  ;;  %v1407_v7 = vsub.f32 0.0, %v3684_v16  ;;  %v1408_v47 = vsub.f32 0.0, %v3687_v11 }
 0x17b   : > { %v1409_v1 = vsub.f32 0.0, %v3698_v60  ;;  %v1410_v4 = vsub.f32 0.0, %v3701_v44  ;;  %v1411_v62 = vsub.f32 0.0, %v3704_v46  ;;  %v1412_v28 = vsub.f32 0.0, %v3707_v53 }
 0x17c   : > { %v1413_v5 = vsub.f32 0.0, %v3718_v8  ;;  %v1414_v61 = vsub.f32 0.0, %v3721_v63  ;;  %v1415_v33 = vsub.f32 0.0, %v3723_v34  ;;  %v1416_v21 = vsub.f32 0.0, %v3725_v20  ;;  %v4618_v63 = vld [vmem:[#allocation130_spill] sm:$0xff] }
 0x17d   : > { %v1497_v16 = vsel %vm1305_vm1, %v1337_v23, %v1401_v31  ;;  %v1498_v11 = vsel %vm1306_vm8, %v1338_v49, %v1402_v15  ;;  %v1499_v60 = vsel %vm1307_vm15, %v1339_v29, %v1403_v17  ;;  %v1500_v44 = vsel %vm1308_vm14, %v1340_v30, %v1404_v9  ;;  %v4620_v23 = vld [vmem:[#allocation58_spill] sm:$0xff] }
 0x17e   : > { %v1501_v46 = vsel %vm1309_vm11, %v1341_v3, %v1405_v39  ;;  %v1502_v53 = vsel %vm1310_vm12, %v1342_v10, %v1406_v13  ;;  %v1503_v15 = vsel %vm1311_vm10, %v1343_v45, %v1407_v7  ;;  %v1504_v49 = vsel %vm1312_vm3, %v1344_v24, %v1408_v47  ;;  %1561 = vst [vmem:[%s3811_s17 + $0x80] sm:$0xff] %v1497_v16  ;;  %v4627_v39 = vld [vmem:[#allocation70_spill] sm:$0xff]  ;;  %v4628_v47 = vld [vmem:[#allocation25_spill] sm:$0xff]  ;;  %v4632_v16 = vld [vmem:[#allocation107_spill] sm:$0xff] }
 0x17f   : > { %1562 = vst [vmem:[%s3811_s17 + $0x88] sm:$0xff] %v1498_v11  ;;  %1563 = vst [vmem:[%s3811_s17 + $0x90] sm:$0xff] %v1499_v60  ;;  %v1505_v24 = vsel %vm1313_vm2, %v1345_v25, %v1409_v1  ;;  %v1506_v10 = vsel %vm1314_vm4, %v1346_v50, %v1410_v4  ;;  %v1507_v3 = vsel %vm1315_vm5, %v1347_v57, %v1411_v62  ;;  %v4629_v4 = vld [vmem:[#allocation87_spill] sm:$0xff] }
 0x180   : > { %1564 = vst [vmem:[%s3811_s17 + $0x98] sm:$0xff] %v1500_v44  ;;  %v1508_v45 = vsel %vm1316_vm13, %v1348_v35, %v1412_v28  ;;  %1565 = vst [vmem:[%s3811_s17 + $0xa0] sm:$0xff] %v1501_v46  ;;  %v1509_v25 = vsel %vm1317_vm6, %v1349_v32, %v1413_v5  ;;  %v1510_v50 = vsel %vm4353_vm0, %v1350_v38, %v1414_v61  ;;  %v4621_v35 = vld [vmem:[#allocation62_spill] sm:$0xff]  ;;  %v4622_v38 = vld [vmem:[#allocation55_spill] sm:$0xff] }
 0x181   : > { %1566 = vst [vmem:[%s3811_s17 + $0xa8] sm:$0xff] %v1502_v53  ;;  %1567 = vst [vmem:[%s3811_s17 + $0xb0] sm:$0xff] %v1503_v15  ;;  %v1511_v57 = vsel %vm4346_vm7, %v1351_v0, %v1415_v33  ;;  %v1512_v30 = vsel %vm4351_vm9, %v1352_v54, %v1416_v21  ;;  %v3855_v7 = vmul.f32 %v3641_v2, %v3488_v52  ;;  %vm4617_vm7 = vcmask 1048512   ;;  %v4623_v2 = vld [vmem:[#allocation61_spill] sm:$0xff]  ;;  %v4624_v54 = vld [vmem:[#allocation68_spill] sm:$0xff] }
 0x182   : > { %1568 = vst [vmem:[%s3811_s17 + $0xb8] sm:$0xff] %v1504_v49  ;;  %1569 = vst [vmem:[%s3811_s17 + $0xc0] sm:$0xff] %v1505_v24  ;;  %v4616_v61 = vrot.slane %v3634_v48, %v4592_v14  ;;  %v3864_v34 = vmul.f32 %v4618_v63, %v4618_v63  ;;  %v4625_v48 = vld [vmem:[#allocation65_spill] sm:$0xff]  ;;  %v4630_v28 = vld [vmem:[#allocation95_spill] sm:$0xff] }
 0x183   : > { %1570 = vst [vmem:[%s3811_s17 + $0xc8] sm:$0xff] %v1506_v10  ;;  %1571 = vst [vmem:[%s3811_s17 + $0xd0] sm:$0xff] %v1507_v3  ;;  %v4631_v33 = vld [vmem:[#allocation100_spill] sm:$0xff]  ;;  %v4633_v60 = vld [vmem:[#allocation115_spill] sm:$0xff] }
 0x184   : > { %1572 = vst [vmem:[%s3811_s17 + $0xd8] sm:$0xff] %v1508_v45  ;;  %1573 = vst [vmem:[%s3811_s17 + $0xe0] sm:$0xff] %v1509_v25  ;;  %v952_v8 = vsel %vm4617_vm7, %v4616_v61, %v3608_v37  ;;  %v4626_v37 = vld [vmem:[#allocation71_spill] sm:$0xff]  ;;  %v4634_v46 = vld [vmem:[#allocation121_spill] sm:$0xff]  ;;  %vm4651_vm7 = vcmp.eq.s32.totalorder %v3617_v27, %v4598_v55 }
 0x185   : > { %1574 = vst [vmem:[%s3811_s17 + $0xe8] sm:$0xff] %v1510_v50  ;;  %1575 = vst [vmem:[%s3811_s17 + $0xf0] sm:$0xff] %v1511_v57  ;;  %v1224_v29 = vmul.f32 %v952_v8, %v4620_v23  ;;  %v1225_v32 = vmul.f32 %v952_v8, %v4621_v35  ;;  %v1226_v52 = vmul.f32 %v952_v8, %v4622_v38  ;;  %v4635_v15 = vld [vmem:[#allocation129_spill] sm:$0xff]  ;;  %v4636_v24 = vld [vmem:[#allocation59_spill] sm:$0xff] }
 0x186   : > { %1576 = vst [vmem:[%s3811_s17 + $0xf8] sm:$0xff] %v1512_v30  ;;  %4619 = vst [vmem:[#allocation9_spill] sm:$0xff] %v3864_v34  ;;  %v1227_v0 = vmul.f32 %v952_v8, %v4623_v2  ;;  %v1228_v31 = vmul.f32 %v952_v8, %v4624_v54  ;;  %v1229_v17 = vmul.f32 %v952_v8, %v4625_v48  ;;  %v4637_v3 = vld [vmem:[#allocation64_spill] sm:$0xff]  ;;  %v4638_v25 = vld [vmem:[#allocation57_spill] sm:$0xff] }
 0x187   : > { %v1230_v9 = vmul.f32 %v952_v8, %v4626_v37  ;;  %v1231_v13 = vmul.f32 %v952_v8, %v4627_v39  ;;  %v1232_v1 = vmul.f32 %v952_v8, %v4628_v47  ;;  %v1233_v62 = vmul.f32 %v952_v8, %v4629_v4  ;;  %v4639_v57 = vld [vmem:[#allocation63_spill] sm:$0xff]  ;;  %v4641_v35 = vld [vmem:[#allocation66_spill] sm:$0xff]  ;;  %v4642_v2 = vld [vmem:[#allocation72_spill] sm:$0xff] }
 0x188   : > { %v1234_v5 = vmul.f32 %v952_v8, %v4630_v28  ;;  %v1235_v21 = vmul.f32 %v952_v8, %v4631_v33  ;;  %v1236_v11 = vmul.f32 %v952_v8, %v4632_v16  ;;  %v1237_v44 = vmul.f32 %v952_v8, %v4633_v60  ;;  %v4640_v61 = vld [vmem:[#allocation67_spill] sm:$0xff]  ;;  %v4643_v48 = vld [vmem:[#allocation69_spill] sm:$0xff]  ;;  %v4645_v4 = vld [vmem:[#allocation88_spill] sm:$0xff] }
 0x189   : > { %v1238_v53 = vmul.f32 %v952_v8, %v4634_v46  ;;  %v1239_v49 = vmul.f32 %v952_v8, %v4635_v15  ;;  %v1321_v10 = vsub.f32 %v4636_v24, %v1224_v29  ;;  %v1322_v45 = vsub.f32 %v4637_v3, %v1225_v32  ;;  %v4644_v39 = vld [vmem:[#allocation47_spill] sm:$0xff]  ;;  %v4646_v28 = vld [vmem:[#allocation94_spill] sm:$0xff]  ;;  %v4647_v16 = vld [vmem:[#allocation101_spill] sm:$0xff] }
 0x18a   : > { %v1323_v50 = vsub.f32 %v4638_v25, %v1226_v52  ;;  %v1324_v30 = vsub.f32 %v4639_v57, %v1227_v0  ;;  %v1325_v23 = vsub.f32 %v4640_v61, %v1228_v31  ;;  %v1326_v38 = vsub.f32 %v4641_v35, %v1229_v17  ;;  %v4648_v46 = vld [vmem:[#allocation108_spill] sm:$0xff]  ;;  %v4649_v24 = vld [vmem:[#allocation118_spill] sm:$0xff] }
 0x18b   : > { %v1327_v54 = vsub.f32 %v4642_v2, %v1230_v9  ;;  %v1328_v37 = vsub.f32 %v4643_v48, %v1231_v13  ;;  %v1329_v47 = vsub.f32 %v4644_v39, %v1232_v1  ;;  %v1330_v8 = vsub.f32 %v4645_v4, %v1233_v62  ;;  %v4650_v25 = vld [vmem:[#allocation122_spill] sm:$0xff] }
 0x18c   : > { %v1331_v33 = vsub.f32 %v4646_v28, %v1234_v5  ;;  %v1332_v60 = vsub.f32 %v4647_v16, %v1235_v21  ;;  %v1333_v15 = vsub.f32 %v4648_v46, %v1236_v11  ;;  %v1334_v3 = vsub.f32 %v4649_v24, %v1237_v44 }
 0x18d   : > { %v1335_v57 = vsub.f32 %v4650_v25, %v1238_v53  ;;  %v1336_v61 = vsub.f32 %v3855_v7, %v1239_v49  ;;  %v1385_v35 = vsub.f32 0.0, %v1224_v29  ;;  %v1386_v2 = vsub.f32 0.0, %v1225_v32 }
 0x18e   : > { %v1387_v20 = vsub.f32 0.0, %v1226_v52  ;;  %v1388_v48 = vsub.f32 0.0, %v1227_v0  ;;  %v1389_v14 = vsub.f32 0.0, %v1228_v31  ;;  %v1390_v39 = vsub.f32 0.0, %v1229_v17 }
 0x18f   : > { %v1391_v63 = vsub.f32 0.0, %v1230_v9  ;;  %v1392_v4 = vsub.f32 0.0, %v1231_v13  ;;  %v1393_v34 = vsub.f32 0.0, %v1232_v1  ;;  %v1394_v28 = vsub.f32 0.0, %v1233_v62 }
 0x190   : > { %v1395_v16 = vsub.f32 0.0, %v1234_v5  ;;  %v1396_v46 = vsub.f32 0.0, %v1235_v21  ;;  %v1397_v24 = vsub.f32 0.0, %v1236_v11  ;;  %v1398_v25 = vsub.f32 0.0, %v1237_v44  ;;  %v4653_v44 = vld [vmem:[#allocation106_spill] sm:$0xff] }
 0x191   : > { %v1399_v51 = vsub.f32 0.0, %v1238_v53  ;;  %v1400_v7 = vsub.f32 0.0, %v1239_v49  ;;  %v1481_v29 = vsel %vm1305_vm1, %v1321_v10, %v1385_v35  ;;  %v1482_v32 = vsel %vm1306_vm8, %v1322_v45, %v1386_v2  ;;  %v4654_v53 = vld [vmem:[#allocation9_spill] sm:$0xff]  ;;  %v1930_v10 = vld [vmem:[%s2147_s30 + $0x1f8] sm:$0xff]  ;;  %v4655_v45 = vld [vmem:[#allocation130_spill] sm:$0xff] }
 0x192   : > { %v1483_v52 = vsel %vm1307_vm15, %v1323_v50, %v1387_v20  ;;  %v1484_v0 = vsel %vm1308_vm14, %v1324_v30, %v1388_v48  ;;  %v1485_v31 = vsel %vm1309_vm11, %v1325_v23, %v1389_v14  ;;  %v1486_v17 = vsel %vm1310_vm12, %v1326_v38, %v1390_v39  ;;  %1545 = vst [vmem:[%s3811_s17] sm:$0xff] %v1481_v29  ;;  %v4657_v30 = vld [vmem:[#allocation43_spill] sm:$0xff]  ;;  %v4668_v2 = vld [vmem:[#allocation36_spill] sm:$0xff]  ;;  %v4673_v29 = vld [vmem:[#allocation89_spill] sm:$0xff] }
 0x193   : > { %v1487_v9 = vsel %vm1311_vm10, %v1327_v54, %v1391_v63  ;;  %v1488_v20 = vsel %vm1312_vm3, %v1328_v37, %v1392_v4  ;;  %1546 = vst [vmem:[%s3811_s17 + $0x8] sm:$0xff] %v1482_v32  ;;  %1547 = vst [vmem:[%s3811_s17 + $0x10] sm:$0xff] %v1483_v52  ;;  %v1489_v14 = vsel %vm1313_vm2, %v1329_v47, %v1393_v34  ;;  %v4660_v54 = vld [vmem:[#allocation73_spill] sm:$0xff]  ;;  %v4661_v37 = vld [vmem:[#allocation114_spill] sm:$0xff] }
 0x194   : > { %1548 = vst [vmem:[%s3811_s17 + $0x18] sm:$0xff] %v1484_v0  ;;  %v1490_v63 = vsel %vm1314_vm4, %v1330_v8, %v1394_v28  ;;  %v1491_v13 = vsel %vm1315_vm5, %v1331_v33, %v1395_v16  ;;  %v1492_v1 = vsel %vm1316_vm13, %v1332_v60, %v1396_v46  ;;  %1549 = vst [vmem:[%s3811_s17 + $0x20] sm:$0xff] %v1485_v31  ;;  %v4664_v8 = vld [vmem:[#allocation10_spill] sm:$0xff]  ;;  %v4665_v60 = vld [vmem:[#allocation13_spill] sm:$0xff] }
 0x195   : > { %1550 = vst [vmem:[%s3811_s17 + $0x28] sm:$0xff] %v1486_v17  ;;  %1551 = vst [vmem:[%s3811_s17 + $0x30] sm:$0xff] %v1487_v9  ;;  %v1493_v34 = vsel %vm1317_vm6, %v1333_v15, %v1397_v24  ;;  %v1494_v62 = vsel %vm4353_vm0, %v1334_v3, %v1398_v25  ;;  %v1495_v5 = vsel %vm4651_vm7, %v1335_v57, %v1399_v51  ;;  %v4656_v51 = vld [vmem:[#allocation126_spill] sm:$0xff]  ;;  %vm4659_vm7 = vcmask 1048512   ;;  %v4666_v3 = vld [vmem:[#allocation48_spill] sm:$0xff] }
 0x196   : > { %1552 = vst [vmem:[%s3811_s17 + $0x38] sm:$0xff] %v1488_v20  ;;  %v1496_v11 = vsel %vm4351_vm9, %v1336_v61, %v1400_v7  ;;  %1553 = vst [vmem:[%s3811_s17 + $0x40] sm:$0xff] %v1489_v14  ;;  %v3966_v49 = vmul.f32 %v4654_v53, %v4653_v44  ;;  %v777_v50 = vmul.f32 %v1930_v10, %v4655_v45  ;;  %vm4662_vm9 = vcmp.gt.f32.partialorder %v4661_v37, 0.0  ;;  %v4667_v61 = vld [vmem:[#allocation15_spill] sm:$0xff]  ;;  %v4670_v28 = vld [vmem:[#allocation54_spill] sm:$0xff] }
 0x197   : > { %1554 = vst [vmem:[%s3811_s17 + $0x48] sm:$0xff] %v1490_v63  ;;  %1555 = vst [vmem:[%s3811_s17 + $0x50] sm:$0xff] %v1491_v13  ;;  %v4658_v23 = vrot.slane %v4655_v45, %v4657_v30  ;;  %v3978_v47 = vsel %vm4662_vm9, %v4660_v54, 0.0  ;;  %v4669_v39 = vld [vmem:[#allocation35_spill] sm:$0xff]  ;;  %v4672_v25 = vld [vmem:[#allocation81_spill] sm:$0xff]  ;;  %vm4694_vm9 = vcmp.eq.s32.totalorder %v3617_v27, %v4598_v55 }
 0x198   : > { %1556 = vst [vmem:[%s3811_s17 + $0x58] sm:$0xff] %v1492_v1  ;;  %1557 = vst [vmem:[%s3811_s17 + $0x60] sm:$0xff] %v1493_v34  ;;  %v4671_v46 = vld [vmem:[#allocation79_spill] sm:$0xff]  ;;  %v4674_v52 = vld [vmem:[#allocation96_spill] sm:$0xff] }
 0x199   : > { %1558 = vst [vmem:[%s3811_s17 + $0x68] sm:$0xff] %v1494_v62  ;;  %1559 = vst [vmem:[%s3811_s17 + $0x70] sm:$0xff] %v1495_v5  ;;  %v1189_v38 = vsel %vm4659_vm7, %v4658_v23, %v4656_v51  ;;  %v4675_v31 = vld [vmem:[#allocation103_spill] sm:$0xff]  ;;  %v4676_v9 = vld [vmem:[#allocation109_spill] sm:$0xff] }
 0x19a   : > { %1560 = vst [vmem:[%s3811_s17 + $0x78] sm:$0xff] %v1496_v11  ;;  %4663 = vst [vmem:[#allocation45_spill] sm:$0xff] %v3978_v47  ;;  %v1272_v33 = vmul.f32 %v1189_v38, %v4664_v8  ;;  %v1273_v15 = vmul.f32 %v1189_v38, %v4665_v60  ;;  %v1274_v57 = vmul.f32 %v1189_v38, %v4666_v3  ;;  %v4677_v14 = vld [vmem:[#allocation116_spill] sm:$0xff]  ;;  %v4678_v13 = vld [vmem:[#allocation125_spill] sm:$0xff] }
 0x19b   : > { %v1275_v35 = vmul.f32 %v1189_v38, %v4667_v61  ;;  %v1276_v48 = vmul.f32 %v1189_v38, %v4668_v2  ;;  %v1277_v4 = vmul.f32 %v1189_v38, %v4669_v39  ;;  %v1278_v16 = vmul.f32 %v1189_v38, %v4670_v28  ;;  %v4679_v62 = vld [vmem:[#allocation28_spill] sm:$0xff]  ;;  %v4680_v11 = vld [vmem:[#allocation46_spill] sm:$0xff]  ;;  %v4681_v53 = vld [vmem:[#allocation53_spill] sm:$0xff] }
 0x19c   : > { %v1279_v24 = vmul.f32 %v1189_v38, %v4671_v46  ;;  %v1280_v7 = vmul.f32 %v1189_v38, %v4672_v25  ;;  %v1281_v32 = vmul.f32 %v1189_v38, %v4673_v29  ;;  %v1282_v0 = vmul.f32 %v1189_v38, %v4674_v52  ;;  %v4682_v45 = vld [vmem:[#allocation16_spill] sm:$0xff]  ;;  %v4683_v23 = vld [vmem:[#allocation51_spill] sm:$0xff]  ;;  %v4684_v8 = vld [vmem:[#allocation42_spill] sm:$0xff] }
 0x19d   : > { %v1283_v17 = vmul.f32 %v1189_v38, %v4675_v31  ;;  %v1284_v20 = vmul.f32 %v1189_v38, %v4676_v9  ;;  %v1285_v63 = vmul.f32 %v1189_v38, %v4677_v14  ;;  %v1286_v1 = vmul.f32 %v1189_v38, %v4678_v13  ;;  %v4685_v3 = vld [vmem:[#allocation22_spill] sm:$0xff]  ;;  %v4686_v2 = vld [vmem:[#allocation80_spill] sm:$0xff]  ;;  %v4687_v28 = vld [vmem:[#allocation83_spill] sm:$0xff] }
 0x19e   : > { %v1287_v34 = vmul.f32 %v1189_v38, %v777_v50  ;;  %v1369_v5 = vsub.f32 %v4679_v62, %v1272_v33  ;;  %v1370_v44 = vsub.f32 %v4680_v11, %v1273_v15  ;;  %v1371_v10 = vsub.f32 %v4681_v53, %v1274_v57  ;;  %v4688_v25 = vld [vmem:[#allocation40_spill] sm:$0xff]  ;;  %v4689_v38 = vld [vmem:[#allocation97_spill] sm:$0xff]  ;;  %v4690_v52 = vld [vmem:[#allocation102_spill] sm:$0xff] }
 0x19f   : > { %v1372_v51 = vsub.f32 %v4682_v45, %v1275_v35  ;;  %v1373_v54 = vsub.f32 %v4683_v23, %v1276_v48  ;;  %v1374_v60 = vsub.f32 %v4684_v8, %v1277_v4  ;;  %v1375_v61 = vsub.f32 %v4685_v3, %v1278_v16  ;;  %v4691_v9 = vld [vmem:[#allocation110_spill] sm:$0xff]  ;;  %v4692_v13 = vld [vmem:[#allocation119_spill] sm:$0xff]  ;;  %v4693_v11 = vld [vmem:[#allocation124_spill] sm:$0xff] }
 0x1a0   : > { %v1376_v39 = vsub.f32 %v4686_v2, %v1279_v24  ;;  %v1377_v46 = vsub.f32 %v4687_v28, %v1280_v7  ;;  %v1378_v50 = vsub.f32 %v4688_v25, %v1281_v32  ;;  %v1379_v29 = vsub.f32 %v4689_v38, %v1282_v0 }
 0x1a1   : > { %v1380_v31 = vsub.f32 %v4690_v52, %v1283_v17  ;;  %v1381_v14 = vsub.f32 %v4691_v9, %v1284_v20  ;;  %v1382_v62 = vsub.f32 %v4692_v13, %v1285_v63  ;;  %v1383_v53 = vsub.f32 %v4693_v11, %v1286_v1 }
 0x1a2   : > { %v1384_v45 = vsub.f32 %v3966_v49, %v1287_v34  ;;  %v1433_v23 = vsub.f32 0.0, %v1272_v33  ;;  %v1434_v8 = vsub.f32 0.0, %v1273_v15  ;;  %v1435_v3 = vsub.f32 0.0, %v1274_v57 }
 0x1a3   : > { %v1436_v2 = vsub.f32 0.0, %v1275_v35  ;;  %v1437_v37 = vsub.f32 0.0, %v1276_v48  ;;  %v1438_v28 = vsub.f32 0.0, %v1277_v4  ;;  %v1439_v30 = vsub.f32 0.0, %v1278_v16 }
 0x1a4   : > { %v1440_v25 = vsub.f32 0.0, %v1279_v24  ;;  %v1441_v47 = vsub.f32 0.0, %v1280_v7  ;;  %v1442_v38 = vsub.f32 0.0, %v1281_v32  ;;  %v1443_v52 = vsub.f32 0.0, %v1282_v0 }
 0x1a5   : > { %v1444_v9 = vsub.f32 0.0, %v1283_v17  ;;  %v1445_v13 = vsub.f32 0.0, %v1284_v20  ;;  %v1446_v11 = vsub.f32 0.0, %v1285_v63  ;;  %v1447_v21 = vsub.f32 0.0, %v1286_v1  ;;  %v4695_v20 = vld [vmem:[#allocation127_spill] sm:$0xff]  ;;  %v4697_v1 = vld [vmem:[#allocation41_spill] sm:$0xff] }
 0x1a6   : > { %v1448_v49 = vsub.f32 0.0, %v1287_v34  ;;  %v1529_v33 = vsel %vm1305_vm1, %v1369_v5, %v1433_v23  ;;  %v1530_v15 = vsel %vm1306_vm8, %v1370_v44, %v1434_v8  ;;  %v1531_v57 = vsel %vm1307_vm15, %v1371_v10, %v1435_v3  ;;  %v4698_v34 = vld [vmem:[#allocation111_spill] sm:$0xff]  ;;  %v4699_v44 = vld [vmem:[#allocation113_spill] sm:$0xff]  ;;  %v4709_v8 = vld [vmem:[#allocation60_spill] sm:$0xff] }
 0x1a7   : > { %v1532_v35 = vsel %vm1308_vm14, %v1372_v51, %v1436_v2  ;;  %v1533_v48 = vsel %vm1309_vm11, %v1373_v54, %v1437_v37  ;;  %v1534_v4 = vsel %vm1310_vm12, %v1374_v60, %v1438_v28  ;;  %v1535_v16 = vsel %vm1311_vm10, %v1375_v61, %v1439_v30  ;;  %1593 = vst [vmem:[%s3811_s17 + $0x180] sm:$0xff] %v1529_v33  ;;  %v4700_v10 = vld [vmem:[#allocation117_spill] sm:$0xff]  ;;  %v4701_v51 = vld [vmem:[#allocation56_spill] sm:$0xff] }
 0x1a8   : > { %v1536_v24 = vsel %vm1312_vm3, %v1376_v39, %v1440_v25  ;;  %1594 = vst [vmem:[%s3811_s17 + $0x188] sm:$0xff] %v1530_v15  ;;  %1595 = vst [vmem:[%s3811_s17 + $0x190] sm:$0xff] %v1531_v57  ;;  %v1537_v37 = vsel %vm1313_vm2, %v1377_v46, %v1441_v47  ;;  %v1538_v30 = vsel %vm1314_vm4, %v1378_v50, %v1442_v38  ;;  %v4704_v60 = vld [vmem:[#allocation45_spill] sm:$0xff]  ;;  %v4705_v39 = vld [vmem:[#allocation43_spill] sm:$0xff] }
 0x1a9   : > { %1596 = vst [vmem:[%s3811_s17 + $0x198] sm:$0xff] %v1532_v35  ;;  %v1539_v7 = vsel %vm1315_vm5, %v1379_v29, %v1443_v52  ;;  %v1540_v32 = vsel %vm1316_vm13, %v1380_v31, %v1444_v9  ;;  %1597 = vst [vmem:[%s3811_s17 + $0x1a0] sm:$0xff] %v1533_v48  ;;  %v1541_v47 = vsel %vm1317_vm6, %v1381_v14, %v1445_v13  ;;  %v4706_v50 = vld [vmem:[#allocation85_spill] sm:$0xff]  ;;  %v4707_v29 = vld [vmem:[#allocation120_spill] sm:$0xff] }
 0x1aa   : > { %1598 = vst [vmem:[%s3811_s17 + $0x1a8] sm:$0xff] %v1534_v4  ;;  %1599 = vst [vmem:[%s3811_s17 + $0x1b0] sm:$0xff] %v1535_v16  ;;  %v1542_v0 = vsel %vm4353_vm0, %v1382_v62, %v1446_v11  ;;  %v1543_v17 = vsel %vm4694_vm9, %v1383_v53, %v1447_v21  ;;  %vm4696_vm7 = vcmp.eq.s32.totalorder %v4695_v20, %v4598_v55  ;;  %vm4703_vm0 = vcmask 917312   ;;  %v1931_v14 = vld [vmem:[%s2147_s30 + $0x168] sm:$0xff]  ;;  %v1932_v53 = vld [vmem:[%s2147_s30 + $0x170] sm:$0xff] }
 0x1ab   : > { %1600 = vst [vmem:[%s3811_s17 + $0x1b8] sm:$0xff] %v1536_v24  ;;  %v1544_v63 = vsel %vm4696_vm7, %v1384_v45, %v1448_v49  ;;  %1601 = vst [vmem:[%s3811_s17 + $0x1c0] sm:$0xff] %v1537_v37  ;;  %v4073_v5 = vmul.f32 %v4698_v34, %v4697_v1  ;;  %v4702_v54 = vrot.slane %v4700_v10, %v4701_v51  ;;  %v4708_v45 = vld [vmem:[#allocation123_spill] sm:$0xff]  ;;  %v4712_v28 = vld [vmem:[#allocation93_spill] sm:$0xff]  ;;  %vm4715_vm9 = vcmask 1048512  }
 0x1ac   : > { %1602 = vst [vmem:[%s3811_s17 + $0x1c8] sm:$0xff] %v1538_v30  ;;  %1603 = vst [vmem:[%s3811_s17 + $0x1d0] sm:$0xff] %v1539_v7  ;;  %v633_v61 = vmul.f32 %v4704_v60, %v4704_v60  ;;  %v1109_v46 = vrot.slane %v4704_v60, %v4705_v39  ;;  %v4090_v31 = vmul.f32 %v4707_v29, %v4706_v50  ;;  %v4713_v25 = vld [vmem:[#allocation128_spill] sm:$0xff]  ;;  %v4714_v52 = vld [vmem:[#allocation114_spill] sm:$0xff] }
 0x1ad   : > { %1604 = vst [vmem:[%s3811_s17 + $0x1d8] sm:$0xff] %v1540_v32  ;;  %v1100_v21 = vsel %vm4703_vm0, %v4702_v54, %v4699_v44  ;;  %1605 = vst [vmem:[%s3811_s17 + $0x1e0] sm:$0xff] %v1541_v47  ;;  %v759_v62 = vmul.f32 %v1931_v14, %v4700_v10  ;;  %v760_v23 = vmul.f32 %v1932_v53, %v4708_v45  ;;  %vm4711_vm0 = vcmask 982912   ;;  %v1933_v13 = vld [vmem:[%s2147_s30 + $0x178] sm:$0xff]  ;;  %v4716_v33 = vld [vmem:[#allocation8_spill] sm:$0xff] }
 0x1ae   : > { %1606 = vst [vmem:[%s3811_s17 + $0x1e8] sm:$0xff] %v1542_v0  ;;  %1607 = vst [vmem:[%s3811_s17 + $0x1f0] sm:$0xff] %v1543_v17  ;;  %v4710_v3 = vrot.slane %v4708_v45, %v4709_v8  ;;  %v4102_v38 = vmul.f32 %v4713_v25, %v4712_v28  ;;  %v4105_v9 = vmul.f32 %v633_v61, %v4714_v52  ;;  %v4717_v57 = vld [vmem:[#allocation29_spill] sm:$0xff]  ;;  %v4718_v48 = vld [vmem:[#allocation32_spill] sm:$0xff] }
 0x1af   : > { %1608 = vst [vmem:[%s3811_s17 + $0x1f8] sm:$0xff] %v1544_v63  ;;  %v761_v11 = vmul.f32 %v1933_v13, %v4704_v60  ;;  %v4719_v16 = vld [vmem:[#allocation14_spill] sm:$0xff]  ;;  %v4720_v37 = vld [vmem:[#allocation37_spill] sm:$0xff]  ;;  %v4721_v7 = vld [vmem:[#allocation52_spill] sm:$0xff] }
 0x1b0   : > { %v1105_v2 = vsel %vm4711_vm0, %v4710_v3, %v1100_v21  ;;  %v4722_v47 = vld [vmem:[#allocation23_spill] sm:$0xff]  ;;  %v4723_v17 = vld [vmem:[#allocation76_spill] sm:$0xff]  ;;  %v4724_v1 = vld [vmem:[#allocation82_spill] sm:$0xff] }
 0x1b1   : > { %v1110_v49 = vsel %vm4715_vm9, %v1109_v46, %v1105_v2  ;;  %v4725_v44 = vld [vmem:[#allocation90_spill] sm:$0xff]  ;;  %v4726_v51 = vld [vmem:[#allocation99_spill] sm:$0xff]  ;;  %v4727_v21 = vld [vmem:[#allocation104_spill] sm:$0xff] }
 0x1b2   : > { %v1256_v15 = vmul.f32 %v1110_v49, %v4716_v33  ;;  %v1257_v35 = vmul.f32 %v1110_v49, %v4717_v57  ;;  %v1258_v4 = vmul.f32 %v1110_v49, %v4718_v48  ;;  %v1259_v24 = vmul.f32 %v1110_v49, %v4719_v16  ;;  %v4728_v61 = vld [vmem:[#allocation112_spill] sm:$0xff]  ;;  %v4729_v14 = vld [vmem:[#allocation26_spill] sm:$0xff]  ;;  %v4731_v3 = vld [vmem:[#allocation33_spill] sm:$0xff] }
 0x1b3   : > { %v1260_v30 = vmul.f32 %v1110_v49, %v4720_v37  ;;  %v1261_v32 = vmul.f32 %v1110_v49, %v4721_v7  ;;  %v1262_v0 = vmul.f32 %v1110_v49, %v4722_v47  ;;  %v1263_v63 = vmul.f32 %v1110_v49, %v4723_v17  ;;  %v4730_v45 = vld [vmem:[#allocation12_spill] sm:$0xff]  ;;  %v4732_v28 = vld [vmem:[#allocation49_spill] sm:$0xff]  ;;  %v4734_v33 = vld [vmem:[#allocation38_spill] sm:$0xff] }
 0x1b4   : > { %v1264_v34 = vmul.f32 %v1110_v49, %v4724_v1  ;;  %v1265_v10 = vmul.f32 %v1110_v49, %v4725_v44  ;;  %v1266_v54 = vmul.f32 %v1110_v49, %v4726_v51  ;;  %v1267_v60 = vmul.f32 %v1110_v49, %v4727_v21  ;;  %v4733_v52 = vld [vmem:[#allocation17_spill] sm:$0xff]  ;;  %v4735_v48 = vld [vmem:[#allocation74_spill] sm:$0xff]  ;;  %v4736_v37 = vld [vmem:[#allocation75_spill] sm:$0xff] }
 0x1b5   : > { %v1268_v39 = vmul.f32 %v1110_v49, %v4728_v61  ;;  %v1269_v46 = vmul.f32 %v1110_v49, %v759_v62  ;;  %v1270_v50 = vmul.f32 %v1110_v49, %v760_v23  ;;  %v1271_v29 = vmul.f32 %v1110_v49, %v761_v11  ;;  %v4737_v47 = vld [vmem:[#allocation84_spill] sm:$0xff]  ;;  %v4738_v23 = vld [vmem:[#allocation91_spill] sm:$0xff]  ;;  %v4739_v49 = vld [vmem:[#allocation98_spill] sm:$0xff] }
 0x1b6   : > { %v1353_v53 = vsub.f32 %v4729_v14, %v1256_v15  ;;  %v1354_v8 = vsub.f32 %v4730_v45, %v1257_v35  ;;  %v1355_v2 = vsub.f32 %v4731_v3, %v1258_v4  ;;  %v1356_v25 = vsub.f32 %v4732_v28, %v1259_v24  ;;  %v4740_v1 = vld [vmem:[#allocation105_spill] sm:$0xff] }
 0x1b7   : > { %v1357_v13 = vsub.f32 %v4733_v52, %v1260_v30  ;;  %v1358_v57 = vsub.f32 %v4734_v33, %v1261_v32  ;;  %v1359_v16 = vsub.f32 %v4735_v48, %v1262_v0  ;;  %v1360_v7 = vsub.f32 %v4736_v37, %v1263_v63 }
 0x1b8   : > { %v1361_v62 = vsub.f32 %v4737_v47, %v1264_v34  ;;  %v1362_v11 = vsub.f32 %v4738_v23, %v1265_v10  ;;  %v1363_v17 = vsub.f32 %v4739_v49, %v1266_v54  ;;  %v1364_v44 = vsub.f32 %v4740_v1, %v1267_v60 }
 0x1b9   : > { %v1365_v51 = vsub.f32 %v4073_v5, %v1268_v39  ;;  %v1366_v21 = vsub.f32 %v4090_v31, %v1269_v46  ;;  %v1367_v61 = vsub.f32 %v4102_v38, %v1270_v50  ;;  %v1368_v14 = vsub.f32 %v4105_v9, %v1271_v29 }
 0x1ba   : > { %v1417_v45 = vsub.f32 0.0, %v1256_v15  ;;  %v1418_v3 = vsub.f32 0.0, %v1257_v35  ;;  %v1419_v28 = vsub.f32 0.0, %v1258_v4  ;;  %v1420_v52 = vsub.f32 0.0, %v1259_v24 }
 0x1bb   : > { %v1421_v33 = vsub.f32 0.0, %v1260_v30  ;;  %v1422_v48 = vsub.f32 0.0, %v1261_v32  ;;  %v1423_v37 = vsub.f32 0.0, %v1262_v0  ;;  %v1424_v47 = vsub.f32 0.0, %v1263_v63 }
 0x1bc   : > { %v1425_v23 = vsub.f32 0.0, %v1264_v34  ;;  %v1426_v49 = vsub.f32 0.0, %v1265_v10  ;;  %v1427_v1 = vsub.f32 0.0, %v1266_v54  ;;  %v1428_v5 = vsub.f32 0.0, %v1267_v60 }
 0x1bd   : > { %v1429_v31 = vsub.f32 0.0, %v1268_v39  ;;  %v1430_v38 = vsub.f32 0.0, %v1269_v46  ;;  %v1431_v9 = vsub.f32 0.0, %v1270_v50  ;;  %v1432_v15 = vsub.f32 0.0, %v1271_v29 }
 0x1be   : > { %v1513_v35 = vsel %vm1305_vm1, %v1353_v53, %v1417_v45  ;;  %v1514_v4 = vsel %vm1306_vm8, %v1354_v8, %v1418_v3  ;;  %v1515_v24 = vsel %vm1307_vm15, %v1355_v2, %v1419_v28  ;;  %v1516_v30 = vsel %vm1308_vm14, %v1356_v25, %v1420_v52  ;;  %vm4743_vm15 = vmmov %vm4696_vm7 }
 0x1bf   : > { %v1517_v32 = vsel %vm1309_vm11, %v1357_v13, %v1421_v33  ;;  %v1518_v41 = vsel %vm1310_vm12, %v1358_v57, %v1422_v48  ;;  %v1519_v36 = vsel %vm1311_vm10, %v1359_v16, %v1423_v37  ;;  %v1520_v22 = vsel %vm1312_vm3, %v1360_v7, %v1424_v47  ;;  %1577 = vst [vmem:[%s3811_s17 + $0x100] sm:$0xff] %v1513_v35 }
 0x1c0   : > { %1578 = vst [vmem:[%s3811_s17 + $0x108] sm:$0xff] %v1514_v4  ;;  %1579 = vst [vmem:[%s3811_s17 + $0x110] sm:$0xff] %v1515_v24  ;;  %v1521_v40 = vsel %vm1313_vm2, %v1361_v62, %v1425_v23  ;;  %v1522_v26 = vsel %vm1314_vm4, %v1362_v11, %v1426_v49  ;;  %v1523_v56 = vsel %vm1315_vm5, %v1363_v17, %v1427_v1 }
 0x1c1   : > { %1580 = vst [vmem:[%s3811_s17 + $0x118] sm:$0xff] %v1516_v30  ;;  %v1524_v58 = vsel %vm1316_vm13, %v1364_v44, %v1428_v5  ;;  %1581 = vst [vmem:[%s3811_s17 + $0x120] sm:$0xff] %v1517_v32  ;;  %v1525_v18 = vsel %vm1317_vm6, %v1365_v51, %v1429_v31  ;;  %vm4741_vm1 = vcmp.eq.s32.totalorder %v3448_v59, %v4598_v55 }
 0x1c2   : > { %1582 = vst [vmem:[%s3811_s17 + $0x128] sm:$0xff] %v1518_v41  ;;  %1583 = vst [vmem:[%s3811_s17 + $0x130] sm:$0xff] %v1519_v36  ;;  %v1526_v43 = vsel %vm4741_vm1, %v1366_v21, %v1430_v38  ;;  %vm4742_vm8 = vcmp.eq.s32.totalorder %v3617_v27, %v4598_v55  ;;  %v1528_v19 = vsel %vm4743_vm15, %v1368_v14, %v1432_v15 }
 0x1c3   : > { %1584 = vst [vmem:[%s3811_s17 + $0x138] sm:$0xff] %v1520_v22  ;;  %v1527_v12 = vsel %vm4742_vm8, %v1367_v61, %v1431_v9  ;;  %1585 = vst [vmem:[%s3811_s17 + $0x140] sm:$0xff] %v1521_v40 }
 0x1c4   : > { %1586 = vst [vmem:[%s3811_s17 + $0x148] sm:$0xff] %v1522_v26  ;;  %1587 = vst [vmem:[%s3811_s17 + $0x150] sm:$0xff] %v1523_v56 }
 0x1c5   : > { %1588 = vst [vmem:[%s3811_s17 + $0x158] sm:$0xff] %v1524_v58  ;;  %1589 = vst [vmem:[%s3811_s17 + $0x160] sm:$0xff] %v1525_v18 }
 0x1c6   : > { %1590 = vst [vmem:[%s3811_s17 + $0x168] sm:$0xff] %v1526_v43  ;;  %1591 = vst [vmem:[%s3811_s17 + $0x170] sm:$0xff] %v1527_v12 }
 0x1c7   : > { %1592 = vst [vmem:[%s3811_s17 + $0x178] sm:$0xff] %v1528_v19 }
 0x1c8   : > { %1975 = shalt.err (!%p1972_p10)
}
 0x1c9   : > { %s1976_s13 = scalar_lea.hbm %s4172_s29, 8192  ;;  %s1980_s20 = scalar_lea.hbm %s4254_s1, 16384 }
 0x1ca   : > { %p1977_p0 = scmp.ne.s32.totalorder %s4172_s29, %s1976_s13  ;;  %p1981_p1 = scmp.lt.s32.totalorder %s4172_s29, %s4254_s1 }
 0x1cb   : > { %p1982_p3 = scmp.lt.s32.totalorder %s1980_s20, %s1976_s13 }
 0x1cc   : > { %p1978_p2 = pnand %p1977_p0, %p4744_p12 }
 0x1cd   : > { %p1983_p6 = por %p1982_p3, %p1981_p1 }
 0x1ce   : > { %p1979_p9 = pneg %p1978_p2 }
 0x1d0   : > { %p1984_p11 = pnand %p1983_p6, %p1979_p9 }
 0x1d2   : > { %1987 = shalt.err (!%p1984_p11)
}
 0x1d3   : > { %s2032_s24 = smov 128   ;;  %s2033_s26 = smov 8  }
 0x1d4   : > { %1719 = dma.vmem_to_hbm [thread:$0]  (%p4744_p12), %s4174_s27, 8192, %s4172_s29, %s1610_s2, %s2032_s24, %s2032_s24, %s2033_s26  }
 0x1d5 PF: > { %s1639_s30 = sand.u32 1, %s2014_s6   ;;  %p4745_p13 = scmp.ne.s32.totalorder %s4357_s19, 0 }
 0x1d6   : > { %p4746_p4 = scmp.ge.s32.totalorder %s2026_s9, 2  ;;  %s1640_s17 = scalar_lea.sflag [#allocation4], %s1639_s30 }
 0x1d8   : > { %p1726_p5 = pnand %p4746_p4, %p4745_p13 }
 0x1da   : > { %p1727_p7 = pneg %p1726_p5 }
 0x1dc   : > { %2009 = dma.done.wait (%p1727_p7), %s1640_s17, 8192  }
 0x1dd   : > { %2011 = vsyncadd (%p1727_p7), %s1640_s17, 4294959104  ;;  %p14_p8 = scmp.ge.s32.totalorder %s2069_s12, 4   ;;  %s4747_s6 = smov %s2018_s7 }
 0x1de   : > { %s4748_s7 = smov %s2022_s8  ;;  %s4749_s8 = smov %s2081_s15 }
 0x1df   : > { %s4750_s9 = smov %s2069_s12  ;;  %16 = sbr.rel (!%p14_p8) target bundleno = 5 (0x5), region = 69 }
 0x1e4   :  { %1645 = vsyncpa [#allocation3], 1 }
 0x1e5   :  { %1647 = vsyncpa [#allocation3 + $0x1], 1 }
 0x1e6   :  { %1648 = vsyncpa [#allocation4], 1 }
 0x1e7   :  { %1650 = vsyncpa [#allocation4 + $0x1], 1 }

</bundles_post_ra>
